<compile_context>
chip_gen: v7x
topology: tpu7x:2x2x1
jax: 0.10.0
libtpu: 0.0.40
codegen_flags: <defaults>
</compile_context>

<pallas_src>
import jax
import jax.numpy as jnp
from jax import lax
from jax.experimental import pallas as pl
from jax.experimental.pallas import tpu as pltpu

BN_EPS = 1e-5
K = 3      # conv kernel size (fixed by the module)
PAD = 1    # padding=1 (fixed by the module)


# ---------------------------------------------------------------------------
# shape bookkeeping for the dilated conv stack
# ---------------------------------------------------------------------------
def _layer_shapes(H, W, num_layers, dil):
    shapes = []
    Hc, Wc = H, W
    for _ in range(num_layers):
        Hp, Wp = Hc + 2 * PAD, Wc + 2 * PAD
        Ho, Wo = Hp - dil * (K - 1), Wp - dil * (K - 1)
        shapes.append((Hc, Wc, Hp, Wp, Ho, Wo))
        Hc, Wc = Ho, Wo
    return shapes, (Hc, Wc)


# ---------------------------------------------------------------------------
# fused kernel: 1x1 conv(+BN)+ReLU -> [dilated 3x3 conv(+BN)+ReLU]*L -> 1x1
#               conv -> per-image attention scalar; all VMEM-resident.
# Layout: activations are channel-major (Cr, spatial), spatial lane-dense.
# ---------------------------------------------------------------------------
def _make_fused_kernel(H, W, C, Cr, num_layers, dil, bt):
    shapes, (Hf, Wf) = _layer_shapes(H, W, num_layers, dil)
    L = num_layers

    def kernel(x_ref, wr_ref, wd_ref, par_ref, o_ref, *pad_refs):
        # Zero the padded slabs once per grid step (halo must be 0; interiors
        # are fully rewritten for every batch element below).  Unconditional
        # on purpose: safe for per-core scratch under a parallel grid.
        for l in range(L):
            pad_refs[l][...] = jnp.zeros_like(pad_refs[l])

        for b in range(bt):            # small static batch tile, unrolled
            # ---- 1x1 reduce conv (BN scale folded into weight) + ReLU ----
            # (Cr, C) @ (C, H*W) -> (Cr, H*W): spatial stays lane-dense.
            h = jnp.dot(wr_ref[...], x_ref[b],
                        preferred_element_type=jnp.float32)
            h = jnp.maximum(h + par_ref[0], 0.0)               # (Cr, H*W)

            # ---- dilated 3x3 conv stack: shift-and-accumulate matmuls ----
            for l, (Hc, Wc, Hp, Wp, Ho, Wo) in enumerate(shapes):
                pr = pad_refs[l]                                # (Cr, Hp*Wp)
                if l == 0:
                    # write interior rows of the zero-padded slab from h;
                    # for l > 0 the interior was already written by the
                    # previous layer's output loop.
                    for r in range(Hc):
                        dst = (r + PAD) * Wp + PAD
                        pr[:, dst:dst + Wc] = h[:, r * Wc:(r + 1) * Wc]

                # 9 taps: one contiguous lane window of the padded slab each,
                # one tiny MXU matmul each, accumulated in f32.
                span = (Ho - 1) * Wp + Wo
                acc = None
                for kh in range(K):
                    for kw in range(K):
                        off = (kh * dil) * Wp + kw * dil
                        win = pr[:, off:off + span]             # (Cr, span)
                        z = jnp.dot(wd_ref[l, kh * K + kw], win,
                                    preferred_element_type=jnp.float32)
                        acc = z if acc is None else acc + z
                y = jnp.maximum(acc + par_ref[1 + l], 0.0)      # (Cr, span)

                # valid outputs sit at lanes oh*Wp + ow; feed them straight
                # into the next layer's padded slab (no compaction pass).
                if l + 1 < L:
                    _, _, _, Wp2, _, _ = shapes[l + 1]
                    prn = pad_refs[l + 1]
                    for oh in range(Ho):
                        dst = (oh + PAD) * Wp2 + PAD
                        prn[:, dst:dst + Wo] = y[:, oh * Wp:oh * Wp + Wo]
                else:
                    h = y[:, 0:1]                               # (Cr, 1)

            # ---- final 1x1 conv (Cr -> 1): per-image attention scalar ----
            res = jnp.sum(h * par_ref[1 + L], axis=0, keepdims=True)  # (1,1)
            res = res + par_ref[2 + L][0:1, :]
            o_ref[b, :, :] = res

    return kernel, (Hf, Wf)


# ---------------------------------------------------------------------------
# parameters / BN folding / forward
# ---------------------------------------------------------------------------
def init_params(key, channel, reduction=16, num_layers=3):
    Cr = channel // reduction
    keys = iter(jax.random.split(key, 8 + 6 * num_layers))

    def nrm(shape, s=0.2):
        return s * jax.random.normal(next(keys), shape, jnp.float32)

    def bn_params():
        gamma = 1.0 + 0.1 * jax.random.normal(next(keys), (Cr,), jnp.float32)
        beta = 0.1 * jax.random.normal(next(keys), (Cr,), jnp.float32)
        mean = 0.1 * jax.random.normal(next(keys), (Cr,), jnp.float32)
        var = 1.0 + 0.1 * jax.random.uniform(next(keys), (Cr,), jnp.float32)
        return (gamma, beta, mean, var)

    return {
        "w_reduce": nrm((channel, Cr)),          # 1x1 conv, stored (Cin, Cout)
        "b_reduce": nrm((Cr,)),
        "bn_reduce": bn_params(),
        "dilated": [
            {"w": nrm((3, 3, Cr, Cr)),           # HWIO
             "b": nrm((Cr,)),
             "bn": bn_params()}
            for _ in range(num_layers)
        ],
        "w_last": nrm((Cr,)),
        "b_last": nrm((1,)),
    }


def _fold_scale_shift(b, bn, eps=BN_EPS):
    gamma, beta, mean, var = bn
    scale = gamma / jnp.sqrt(var + eps)
    shift = b * scale + beta - mean * scale   # == BN(conv_out + b) residual
    return scale, shift


def _pick_bt(B):
    """Batch elements per grid step: amortise step overhead on 1-TC chips but
    keep >= 2 parallel programs (v7x has 2 TensorCores) whenever B >= 2."""
    if B < 4:
        return 1
    best = 1
    for cand in range(2, min(8, B // 2) + 1):
        if B % cand == 0:
            best = cand
    return best


def spatial_attention_forward(x_nchw, params, dia_val=2, bt=None):
    B, C, H, W = x_nchw.shape
    Cr = params["w_reduce"].shape[1]
    L = len(params["dilated"])

    if bt is None:
        bt = _pick_bt(B)
    assert B % bt == 0

    kernel, (Hf, Wf) = _make_fused_kernel(H, W, C, Cr, L, dia_val, bt)
    # torch expand_as requires the collapsed spatial to broadcast back to (H, W)
    assert Hf == 1 and Wf == 1, "expand_as would fail in PyTorch for this shape"

    # free reshape of NCHW (no transpose): channel-major (C, H*W) per element
    x = x_nchw.astype(jnp.float32).reshape(B, C, H * W)

    # ---- fold conv bias + BatchNorm(eval); fold BN scale into the weights ----
    sr, tr = _fold_scale_shift(params["b_reduce"], params["bn_reduce"])
    wrT = (params["w_reduce"].T * sr[:, None]).astype(jnp.float32)   # (Cr, C)

    wd_list, td_list = [], []
    for layer in params["dilated"]:
        s, t = _fold_scale_shift(layer["b"], layer["bn"])
        w = layer["w"]                                   # (3,3,Cin,Cout) HWIO
        taps = [w[kh, kw].T * s[:, None]                 # (Cout, Cin) scaled
                for kh in range(K) for kw in range(K)]
        wd_list.append(jnp.stack(taps))                  # (9, Cr, Cr)
        td_list.append(t)
    wd = jnp.stack(wd_list).astype(jnp.float32)          # (L, 9, Cr, Cr)

    # pack remaining per-channel vectors: [tr, td_0..td_{L-1}, w_last, b_last]
    cols = [tr] + td_list + [params["w_last"],
                             jnp.broadcast_to(params["b_last"], (Cr,))]
    par = jnp.stack(cols).reshape(L + 3, Cr, 1).astype(jnp.float32)

    # VMEM scratch: one zero-padded slab per dilated layer (channel-major)
    layer_shapes, _ = _layer_shapes(H, W, L, dia_val)
    scratch = [pltpu.VMEM((Cr, Hp * Wp), jnp.float32)
               for (_, _, Hp, Wp, _, _) in layer_shapes]

    att = pl.pallas_call(
        kernel,
        out_shape=jax.ShapeDtypeStruct((B, 1, 1), jnp.float32),
        grid_spec=pltpu.PrefetchScalarGridSpec(
            num_scalar_prefetch=0,
            grid=(B // bt,),
            in_specs=[
                pl.BlockSpec((bt, C, H * W), lambda i: (i, 0, 0)),
                pl.BlockSpec((Cr, C), lambda i: (0, 0)),
                pl.BlockSpec((L, K * K, Cr, Cr), lambda i: (0, 0, 0, 0)),
                pl.BlockSpec((L + 3, Cr, 1), lambda i: (0, 0, 0)),
            ],
            out_specs=pl.BlockSpec((bt, 1, 1), lambda i: (i, 0, 0)),
            scratch_shapes=scratch,
        ),
        compiler_params=pltpu.CompilerParams(
            dimension_semantics=("parallel",)),   # batch across TCs on v7x
    )(x, wrT, wd, par)

    # expand_as: broadcast the per-image attention scalar back to x's shape
    # in the wrapper so XLA can fuse it into downstream consumers.
    return jnp.broadcast_to(att.reshape(B, 1, 1, 1), (B, C, H, W))


# ---------------------------------------------------------------------------
# pure-JAX reference for validation
# ---------------------------------------------------------------------------
def reference_forward(x_nchw, params, dia_val=2, eps=BN_EPS):
    B, C, H, W = x_nchw.shape
    Cr = params["w_reduce"].shape[1]
    x = jnp.transpose(x_nchw, (0, 2, 3, 1)).astype(jnp.float32)
    dn = ("NHWC", "HWIO", "NHWC")

    def bn(y, p):
        gamma, beta, mean, var = p
        return (y - mean) / jnp.sqrt(var + eps) * gamma + beta

    y = lax.conv_general_dilated(x, params["w_reduce"].reshape(1, 1, C, Cr),
                                 (1, 1), ((0, 0), (0, 0)), dimension_numbers=dn)
    y = jax.nn.relu(bn(y + params["b_reduce"], params["bn_reduce"]))
    for layer in params["dilated"]:
        y = lax.conv_general_dilated(y, layer["w"], (1, 1), ((1, 1), (1, 1)),
                                     rhs_dilation=(dia_val, dia_val),
                                     dimension_numbers=dn)
        y = jax.nn.relu(bn(y + layer["b"], layer["bn"]))
    y = lax.conv_general_dilated(y, params["w_last"].reshape(1, 1, Cr, 1),
                                 (1, 1), ((0, 0), (0, 0)), dimension_numbers=dn)
    y = y + params["b_last"]
    res = jnp.transpose(y, (0, 3, 1, 2))  # (B, 1, hf, wf)
    return jnp.broadcast_to(res, (B, C, H, W))


if __name__ == "__main__":
    # H=W=7 so that three (padding=1, dilation=2) convs shrink 7->5->3->1 and
    # PyTorch's expand_as works; channel=64, reduction=16 -> Cr=4.
    B, C, H, W = 2, 64, 7, 7
    key = jax.random.PRNGKey(0)
    kx, kp = jax.random.split(key)
    x = jax.random.normal(kx, (B, C, H, W), jnp.float32)
    params = init_params(kp, C, reduction=16, num_layers=3)

    out = jax.block_until_ready(spatial_attention_forward(x, params, dia_val=2))
    ref = jax.block_until_ready(reference_forward(x, params, dia_val=2))

    assert out.shape == (B, C, H, W) and out.dtype == jnp.float32
    max_err = float(jnp.max(jnp.abs(out - ref)))
    assert max_err < 1e-4, f"mismatch vs reference: {max_err}"
    print("KERNEL_OK")
</pallas_src>

<mosaic_0001>
module attributes {stable_mosaic.version = 11 : i64} {
  func.func @kernel(%arg0: i32, %arg1: memref<1x64x49xf32, #tpu.memory_space<vmem>>, %arg2: memref<4x64xf32, #tpu.memory_space<vmem>>, %arg3: memref<3x9x4x4xf32, #tpu.memory_space<vmem>>, %arg4: memref<6x4x1xf32, #tpu.memory_space<vmem>>, %arg5: memref<1x1x1xf32, #tpu.memory_space<vmem>>, %arg6: memref<4x81xf32, #tpu.memory_space<vmem>>, %arg7: memref<4x49xf32, #tpu.memory_space<vmem>>, %arg8: memref<4x25xf32, #tpu.memory_space<vmem>>) attributes {dimension_semantics = [#tpu.dimension_semantics<parallel>], iteration_bounds = array<i64: 2>, scalar_prefetch = 0 : i64, scratch_operands = 3 : i64, tpu.core_type = #tpu.core_type<tc>, window_params = [{transform_indices = @transform_0, window_bounds = array<i64: 1, 64, 49>}, {pipeline_mode = #tpu.pipeline_mode<synchronous>, transform_indices = @transform_1, window_bounds = array<i64: 4, 64>}, {pipeline_mode = #tpu.pipeline_mode<synchronous>, transform_indices = @transform_2, window_bounds = array<i64: 3, 9, 4, 4>}, {pipeline_mode = #tpu.pipeline_mode<synchronous>, transform_indices = @transform_3, window_bounds = array<i64: 6, 4, 1>}, {transform_indices = @transform_4, window_bounds = array<i64: 1, 1, 1>}]} {
    %cst = arith.constant 0.000000e+00 : f32
    %0 = vector.broadcast %cst : f32 to vector<4x81xf32>
    %c0 = arith.constant 0 : index
    %c0_0 = arith.constant 0 : index
    %1 = vector.load %arg6[%c0, %c0_0] : memref<4x81xf32, #tpu.memory_space<vmem>>, vector<4x81xf32>
    tpu.vector_store %arg6[%c0, %c0_0], %0 {strides = array<i32>} : memref<4x81xf32, #tpu.memory_space<vmem>>, vector<4x81xf32>,
    %cst_1 = arith.constant 0.000000e+00 : f32
    %2 = vector.broadcast %cst_1 : f32 to vector<4x49xf32>
    %c0_2 = arith.constant 0 : index
    %c0_3 = arith.constant 0 : index
    %3 = vector.load %arg7[%c0_2, %c0_3] : memref<4x49xf32, #tpu.memory_space<vmem>>, vector<4x49xf32>
    tpu.vector_store %arg7[%c0_2, %c0_3], %2 {strides = array<i32>} : memref<4x49xf32, #tpu.memory_space<vmem>>, vector<4x49xf32>,
    %cst_4 = arith.constant 0.000000e+00 : f32
    %4 = vector.broadcast %cst_4 : f32 to vector<4x25xf32>
    %c0_5 = arith.constant 0 : index
    %c0_6 = arith.constant 0 : index
    %5 = vector.load %arg8[%c0_5, %c0_6] : memref<4x25xf32, #tpu.memory_space<vmem>>, vector<4x25xf32>
    tpu.vector_store %arg8[%c0_5, %c0_6], %4 {strides = array<i32>} : memref<4x25xf32, #tpu.memory_space<vmem>>, vector<4x25xf32>,
    %c0_7 = arith.constant 0 : index
    %c0_8 = arith.constant 0 : index
    %6 = vector.load %arg2[%c0_7, %c0_8] : memref<4x64xf32, #tpu.memory_space<vmem>>, vector<4x64xf32>
    %c0_9 = arith.constant 0 : index
    %c0_10 = arith.constant 0 : index
    %c0_11 = arith.constant 0 : index
    %7 = vector.load %arg1[%c0_9, %c0_10, %c0_11] : memref<1x64x49xf32, #tpu.memory_space<vmem>>, vector<1x64x49xf32>
    %8 = vector.shape_cast %7 : vector<1x64x49xf32> to vector<64x49xf32>
    %cst_12 = arith.constant dense<0.000000e+00> : vector<4x49xf32>
    %9 = tpu.matmul %6, %8, %cst_12 {dimension_numbers = #tpu.dot_dimension_numbers<[1], [0], [0], [1], [0, 0, 1, 1], [], []>} : vector<4x64xf32>, vector<64x49xf32>, vector<4x49xf32> -> vector<4x49xf32>
    %c0_13 = arith.constant 0 : index
    %c0_14 = arith.constant 0 : index
    %c0_15 = arith.constant 0 : index
    %10 = vector.load %arg4[%c0_13, %c0_14, %c0_15] : memref<6x4x1xf32, #tpu.memory_space<vmem>>, vector<1x4x1xf32>
    %11 = vector.shape_cast %10 : vector<1x4x1xf32> to vector<4x1xf32>
    %12 = vector.broadcast %11 : vector<4x1xf32> to vector<4x49xf32>
    %13 = arith.addf %9, %12 : vector<4x49xf32>
    %cst_16 = arith.constant 0.000000e+00 : f32
    %14 = vector.broadcast %cst_16 : f32 to vector<4x49xf32>
    %15 = arith.maximumf %13, %14 : vector<4x49xf32>
    %16 = vector.extract_strided_slice %15 {offsets = [0, 0], sizes = [4, 7], strides = [1, 1]} : vector<4x49xf32> to vector<4x7xf32>
    %c0_17 = arith.constant 0 : index
    %c10 = arith.constant 10 : index
    %17 = vector.load %arg6[%c0_17, %c10] : memref<4x81xf32, #tpu.memory_space<vmem>>, vector<4x7xf32>
    tpu.vector_store %arg6[%c0_17, %c10], %16 {strides = array<i32>} : memref<4x81xf32, #tpu.memory_space<vmem>>, vector<4x7xf32>,
    %18 = vector.extract_strided_slice %15 {offsets = [0, 7], sizes = [4, 7], strides = [1, 1]} : vector<4x49xf32> to vector<4x7xf32>
    %c0_18 = arith.constant 0 : index
    %c19 = arith.constant 19 : index
    %19 = vector.load %arg6[%c0_18, %c19] : memref<4x81xf32, #tpu.memory_space<vmem>>, vector<4x7xf32>
    tpu.vector_store %arg6[%c0_18, %c19], %18 {strides = array<i32>} : memref<4x81xf32, #tpu.memory_space<vmem>>, vector<4x7xf32>,
    %20 = vector.extract_strided_slice %15 {offsets = [0, 14], sizes = [4, 7], strides = [1, 1]} : vector<4x49xf32> to vector<4x7xf32>
    %c0_19 = arith.constant 0 : index
    %c28 = arith.constant 28 : index
    %21 = vector.load %arg6[%c0_19, %c28] : memref<4x81xf32, #tpu.memory_space<vmem>>, vector<4x7xf32>
    tpu.vector_store %arg6[%c0_19, %c28], %20 {strides = array<i32>} : memref<4x81xf32, #tpu.memory_space<vmem>>, vector<4x7xf32>,
    %22 = vector.extract_strided_slice %15 {offsets = [0, 21], sizes = [4, 7], strides = [1, 1]} : vector<4x49xf32> to vector<4x7xf32>
    %c0_20 = arith.constant 0 : index
    %c37 = arith.constant 37 : index
    %23 = vector.load %arg6[%c0_20, %c37] : memref<4x81xf32, #tpu.memory_space<vmem>>, vector<4x7xf32>
    tpu.vector_store %arg6[%c0_20, %c37], %22 {strides = array<i32>} : memref<4x81xf32, #tpu.memory_space<vmem>>, vector<4x7xf32>,
    %24 = vector.extract_strided_slice %15 {offsets = [0, 28], sizes = [4, 7], strides = [1, 1]} : vector<4x49xf32> to vector<4x7xf32>
    %c0_21 = arith.constant 0 : index
    %c46 = arith.constant 46 : index
    %25 = vector.load %arg6[%c0_21, %c46] : memref<4x81xf32, #tpu.memory_space<vmem>>, vector<4x7xf32>
    tpu.vector_store %arg6[%c0_21, %c46], %24 {strides = array<i32>} : memref<4x81xf32, #tpu.memory_space<vmem>>, vector<4x7xf32>,
    %26 = vector.extract_strided_slice %15 {offsets = [0, 35], sizes = [4, 7], strides = [1, 1]} : vector<4x49xf32> to vector<4x7xf32>
    %c0_22 = arith.constant 0 : index
    %c55 = arith.constant 55 : index
    %27 = vector.load %arg6[%c0_22, %c55] : memref<4x81xf32, #tpu.memory_space<vmem>>, vector<4x7xf32>
    tpu.vector_store %arg6[%c0_22, %c55], %26 {strides = array<i32>} : memref<4x81xf32, #tpu.memory_space<vmem>>, vector<4x7xf32>,
    %28 = vector.extract_strided_slice %15 {offsets = [0, 42], sizes = [4, 7], strides = [1, 1]} : vector<4x49xf32> to vector<4x7xf32>
    %c0_23 = arith.constant 0 : index
    %c64 = arith.constant 64 : index
    %29 = vector.load %arg6[%c0_23, %c64] : memref<4x81xf32, #tpu.memory_space<vmem>>, vector<4x7xf32>
    tpu.vector_store %arg6[%c0_23, %c64], %28 {strides = array<i32>} : memref<4x81xf32, #tpu.memory_space<vmem>>, vector<4x7xf32>,
    %c0_24 = arith.constant 0 : index
    %c0_25 = arith.constant 0 : index
    %30 = vector.load %arg6[%c0_24, %c0_25] : memref<4x81xf32, #tpu.memory_space<vmem>>, vector<4x41xf32>
    %c0_26 = arith.constant 0 : index
    %c0_27 = arith.constant 0 : index
    %c0_28 = arith.constant 0 : index
    %c0_29 = arith.constant 0 : index
    %31 = vector.load %arg3[%c0_26, %c0_27, %c0_28, %c0_29] : memref<3x9x4x4xf32, #tpu.memory_space<vmem>>, vector<1x1x4x4xf32>
    %32 = vector.shape_cast %31 : vector<1x1x4x4xf32> to vector<4x4xf32>
    %cst_30 = arith.constant dense<0.000000e+00> : vector<4x41xf32>
    %33 = tpu.matmul %32, %30, %cst_30 {dimension_numbers = #tpu.dot_dimension_numbers<[1], [0], [0], [1], [0, 0, 1, 1], [], []>} : vector<4x4xf32>, vector<4x41xf32>, vector<4x41xf32> -> vector<4x41xf32>
    %c0_31 = arith.constant 0 : index
    %c2 = arith.constant 2 : index
    %34 = vector.load %arg6[%c0_31, %c2] : memref<4x81xf32, #tpu.memory_space<vmem>>, vector<4x41xf32>
    %c0_32 = arith.constant 0 : index
    %c1 = arith.constant 1 : index
    %c0_33 = arith.constant 0 : index
    %c0_34 = arith.constant 0 : index
    %35 = vector.load %arg3[%c0_32, %c1, %c0_33, %c0_34] : memref<3x9x4x4xf32, #tpu.memory_space<vmem>>, vector<1x1x4x4xf32>
    %36 = vector.shape_cast %35 : vector<1x1x4x4xf32> to vector<4x4xf32>
    %cst_35 = arith.constant dense<0.000000e+00> : vector<4x41xf32>
    %37 = tpu.matmul %36, %34, %cst_35 {dimension_numbers = #tpu.dot_dimension_numbers<[1], [0], [0], [1], [0, 0, 1, 1], [], []>} : vector<4x4xf32>, vector<4x41xf32>, vector<4x41xf32> -> vector<4x41xf32>
    %38 = arith.addf %33, %37 : vector<4x41xf32>
    %c0_36 = arith.constant 0 : index
    %c4 = arith.constant 4 : index
    %39 = vector.load %arg6[%c0_36, %c4] : memref<4x81xf32, #tpu.memory_space<vmem>>, vector<4x41xf32>
    %c0_37 = arith.constant 0 : index
    %c2_38 = arith.constant 2 : index
    %c0_39 = arith.constant 0 : index
    %c0_40 = arith.constant 0 : index
    %40 = vector.load %arg3[%c0_37, %c2_38, %c0_39, %c0_40] : memref<3x9x4x4xf32, #tpu.memory_space<vmem>>, vector<1x1x4x4xf32>
    %41 = vector.shape_cast %40 : vector<1x1x4x4xf32> to vector<4x4xf32>
    %cst_41 = arith.constant dense<0.000000e+00> : vector<4x41xf32>
    %42 = tpu.matmul %41, %39, %cst_41 {dimension_numbers = #tpu.dot_dimension_numbers<[1], [0], [0], [1], [0, 0, 1, 1], [], []>} : vector<4x4xf32>, vector<4x41xf32>, vector<4x41xf32> -> vector<4x41xf32>
    %43 = arith.addf %38, %42 : vector<4x41xf32>
    %c0_42 = arith.constant 0 : index
    %c18 = arith.constant 18 : index
    %44 = vector.load %arg6[%c0_42, %c18] : memref<4x81xf32, #tpu.memory_space<vmem>>, vector<4x41xf32>
    %c0_43 = arith.constant 0 : index
    %c3 = arith.constant 3 : index
    %c0_44 = arith.constant 0 : index
    %c0_45 = arith.constant 0 : index
    %45 = vector.load %arg3[%c0_43, %c3, %c0_44, %c0_45] : memref<3x9x4x4xf32, #tpu.memory_space<vmem>>, vector<1x1x4x4xf32>
    %46 = vector.shape_cast %45 : vector<1x1x4x4xf32> to vector<4x4xf32>
    %cst_46 = arith.constant dense<0.000000e+00> : vector<4x41xf32>
    %47 = tpu.matmul %46, %44, %cst_46 {dimension_numbers = #tpu.dot_dimension_numbers<[1], [0], [0], [1], [0, 0, 1, 1], [], []>} : vector<4x4xf32>, vector<4x41xf32>, vector<4x41xf32> -> vector<4x41xf32>
    %48 = arith.addf %43, %47 : vector<4x41xf32>
    %c0_47 = arith.constant 0 : index
    %c20 = arith.constant 20 : index
    %49 = vector.load %arg6[%c0_47, %c20] : memref<4x81xf32, #tpu.memory_space<vmem>>, vector<4x41xf32>
    %c0_48 = arith.constant 0 : index
    %c4_49 = arith.constant 4 : index
    %c0_50 = arith.constant 0 : index
    %c0_51 = arith.constant 0 : index
    %50 = vector.load %arg3[%c0_48, %c4_49, %c0_50, %c0_51] : memref<3x9x4x4xf32, #tpu.memory_space<vmem>>, vector<1x1x4x4xf32>
    %51 = vector.shape_cast %50 : vector<1x1x4x4xf32> to vector<4x4xf32>
    %cst_52 = arith.constant dense<0.000000e+00> : vector<4x41xf32>
    %52 = tpu.matmul %51, %49, %cst_52 {dimension_numbers = #tpu.dot_dimension_numbers<[1], [0], [0], [1], [0, 0, 1, 1], [], []>} : vector<4x4xf32>, vector<4x41xf32>, vector<4x41xf32> -> vector<4x41xf32>
    %53 = arith.addf %48, %52 : vector<4x41xf32>
    %c0_53 = arith.constant 0 : index
    %c22 = arith.constant 22 : index
    %54 = vector.load %arg6[%c0_53, %c22] : memref<4x81xf32, #tpu.memory_space<vmem>>, vector<4x41xf32>
    %c0_54 = arith.constant 0 : index
    %c5 = arith.constant 5 : index
    %c0_55 = arith.constant 0 : index
    %c0_56 = arith.constant 0 : index
    %55 = vector.load %arg3[%c0_54, %c5, %c0_55, %c0_56] : memref<3x9x4x4xf32, #tpu.memory_space<vmem>>, vector<1x1x4x4xf32>
    %56 = vector.shape_cast %55 : vector<1x1x4x4xf32> to vector<4x4xf32>
    %cst_57 = arith.constant dense<0.000000e+00> : vector<4x41xf32>
    %57 = tpu.matmul %56, %54, %cst_57 {dimension_numbers = #tpu.dot_dimension_numbers<[1], [0], [0], [1], [0, 0, 1, 1], [], []>} : vector<4x4xf32>, vector<4x41xf32>, vector<4x41xf32> -> vector<4x41xf32>
    %58 = arith.addf %53, %57 : vector<4x41xf32>
    %c0_58 = arith.constant 0 : index
    %c36 = arith.constant 36 : index
    %59 = vector.load %arg6[%c0_58, %c36] : memref<4x81xf32, #tpu.memory_space<vmem>>, vector<4x41xf32>
    %c0_59 = arith.constant 0 : index
    %c6 = arith.constant 6 : index
    %c0_60 = arith.constant 0 : index
    %c0_61 = arith.constant 0 : index
    %60 = vector.load %arg3[%c0_59, %c6, %c0_60, %c0_61] : memref<3x9x4x4xf32, #tpu.memory_space<vmem>>, vector<1x1x4x4xf32>
    %61 = vector.shape_cast %60 : vector<1x1x4x4xf32> to vector<4x4xf32>
    %cst_62 = arith.constant dense<0.000000e+00> : vector<4x41xf32>
    %62 = tpu.matmul %61, %59, %cst_62 {dimension_numbers = #tpu.dot_dimension_numbers<[1], [0], [0], [1], [0, 0, 1, 1], [], []>} : vector<4x4xf32>, vector<4x41xf32>, vector<4x41xf32> -> vector<4x41xf32>
    %63 = arith.addf %58, %62 : vector<4x41xf32>
    %c0_63 = arith.constant 0 : index
    %c38 = arith.constant 38 : index
    %64 = vector.load %arg6[%c0_63, %c38] : memref<4x81xf32, #tpu.memory_space<vmem>>, vector<4x41xf32>
    %c0_64 = arith.constant 0 : index
    %c7 = arith.constant 7 : index
    %c0_65 = arith.constant 0 : index
    %c0_66 = arith.constant 0 : index
    %65 = vector.load %arg3[%c0_64, %c7, %c0_65, %c0_66] : memref<3x9x4x4xf32, #tpu.memory_space<vmem>>, vector<1x1x4x4xf32>
    %66 = vector.shape_cast %65 : vector<1x1x4x4xf32> to vector<4x4xf32>
    %cst_67 = arith.constant dense<0.000000e+00> : vector<4x41xf32>
    %67 = tpu.matmul %66, %64, %cst_67 {dimension_numbers = #tpu.dot_dimension_numbers<[1], [0], [0], [1], [0, 0, 1, 1], [], []>} : vector<4x4xf32>, vector<4x41xf32>, vector<4x41xf32> -> vector<4x41xf32>
    %68 = arith.addf %63, %67 : vector<4x41xf32>
    %c0_68 = arith.constant 0 : index
    %c40 = arith.constant 40 : index
    %69 = vector.load %arg6[%c0_68, %c40] : memref<4x81xf32, #tpu.memory_space<vmem>>, vector<4x41xf32>
    %c0_69 = arith.constant 0 : index
    %c8 = arith.constant 8 : index
    %c0_70 = arith.constant 0 : index
    %c0_71 = arith.constant 0 : index
    %70 = vector.load %arg3[%c0_69, %c8, %c0_70, %c0_71] : memref<3x9x4x4xf32, #tpu.memory_space<vmem>>, vector<1x1x4x4xf32>
    %71 = vector.shape_cast %70 : vector<1x1x4x4xf32> to vector<4x4xf32>
    %cst_72 = arith.constant dense<0.000000e+00> : vector<4x41xf32>
    %72 = tpu.matmul %71, %69, %cst_72 {dimension_numbers = #tpu.dot_dimension_numbers<[1], [0], [0], [1], [0, 0, 1, 1], [], []>} : vector<4x4xf32>, vector<4x41xf32>, vector<4x41xf32> -> vector<4x41xf32>
    %73 = arith.addf %68, %72 : vector<4x41xf32>
    %c1_73 = arith.constant 1 : index
    %c0_74 = arith.constant 0 : index
    %c0_75 = arith.constant 0 : index
    %74 = vector.load %arg4[%c1_73, %c0_74, %c0_75] : memref<6x4x1xf32, #tpu.memory_space<vmem>>, vector<1x4x1xf32>
    %75 = vector.shape_cast %74 : vector<1x4x1xf32> to vector<4x1xf32>
    %76 = vector.broadcast %75 : vector<4x1xf32> to vector<4x41xf32>
    %77 = arith.addf %73, %76 : vector<4x41xf32>
    %cst_76 = arith.constant 0.000000e+00 : f32
    %78 = vector.broadcast %cst_76 : f32 to vector<4x41xf32>
    %79 = arith.maximumf %77, %78 : vector<4x41xf32>
    %80 = vector.extract_strided_slice %79 {offsets = [0, 0], sizes = [4, 5], strides = [1, 1]} : vector<4x41xf32> to vector<4x5xf32>
    %c0_77 = arith.constant 0 : index
    %c8_78 = arith.constant 8 : index
    %81 = vector.load %arg7[%c0_77, %c8_78] : memref<4x49xf32, #tpu.memory_space<vmem>>, vector<4x5xf32>
    tpu.vector_store %arg7[%c0_77, %c8_78], %80 {strides = array<i32>} : memref<4x49xf32, #tpu.memory_space<vmem>>, vector<4x5xf32>,
    %82 = vector.extract_strided_slice %79 {offsets = [0, 9], sizes = [4, 5], strides = [1, 1]} : vector<4x41xf32> to vector<4x5xf32>
    %c0_79 = arith.constant 0 : index
    %c15 = arith.constant 15 : index
    %83 = vector.load %arg7[%c0_79, %c15] : memref<4x49xf32, #tpu.memory_space<vmem>>, vector<4x5xf32>
    tpu.vector_store %arg7[%c0_79, %c15], %82 {strides = array<i32>} : memref<4x49xf32, #tpu.memory_space<vmem>>, vector<4x5xf32>,
    %84 = vector.extract_strided_slice %79 {offsets = [0, 18], sizes = [4, 5], strides = [1, 1]} : vector<4x41xf32> to vector<4x5xf32>
    %c0_80 = arith.constant 0 : index
    %c22_81 = arith.constant 22 : index
    %85 = vector.load %arg7[%c0_80, %c22_81] : memref<4x49xf32, #tpu.memory_space<vmem>>, vector<4x5xf32>
    tpu.vector_store %arg7[%c0_80, %c22_81], %84 {strides = array<i32>} : memref<4x49xf32, #tpu.memory_space<vmem>>, vector<4x5xf32>,
    %86 = vector.extract_strided_slice %79 {offsets = [0, 27], sizes = [4, 5], strides = [1, 1]} : vector<4x41xf32> to vector<4x5xf32>
    %c0_82 = arith.constant 0 : index
    %c29 = arith.constant 29 : index
    %87 = vector.load %arg7[%c0_82, %c29] : memref<4x49xf32, #tpu.memory_space<vmem>>, vector<4x5xf32>
    tpu.vector_store %arg7[%c0_82, %c29], %86 {strides = array<i32>} : memref<4x49xf32, #tpu.memory_space<vmem>>, vector<4x5xf32>,
    %88 = vector.extract_strided_slice %79 {offsets = [0, 36], sizes = [4, 5], strides = [1, 1]} : vector<4x41xf32> to vector<4x5xf32>
    %c0_83 = arith.constant 0 : index
    %c36_84 = arith.constant 36 : index
    %89 = vector.load %arg7[%c0_83, %c36_84] : memref<4x49xf32, #tpu.memory_space<vmem>>, vector<4x5xf32>
    tpu.vector_store %arg7[%c0_83, %c36_84], %88 {strides = array<i32>} : memref<4x49xf32, #tpu.memory_space<vmem>>, vector<4x5xf32>,
    %c0_85 = arith.constant 0 : index
    %c0_86 = arith.constant 0 : index
    %90 = vector.load %arg7[%c0_85, %c0_86] : memref<4x49xf32, #tpu.memory_space<vmem>>, vector<4x17xf32>
    %c1_87 = arith.constant 1 : index
    %c0_88 = arith.constant 0 : index
    %c0_89 = arith.constant 0 : index
    %c0_90 = arith.constant 0 : index
    %91 = vector.load %arg3[%c1_87, %c0_88, %c0_89, %c0_90] : memref<3x9x4x4xf32, #tpu.memory_space<vmem>>, vector<1x1x4x4xf32>
    %92 = vector.shape_cast %91 : vector<1x1x4x4xf32> to vector<4x4xf32>
    %cst_91 = arith.constant dense<0.000000e+00> : vector<4x17xf32>
    %93 = tpu.matmul %92, %90, %cst_91 {dimension_numbers = #tpu.dot_dimension_numbers<[1], [0], [0], [1], [0, 0, 1, 1], [], []>} : vector<4x4xf32>, vector<4x17xf32>, vector<4x17xf32> -> vector<4x17xf32>
    %c0_92 = arith.constant 0 : index
    %c2_93 = arith.constant 2 : index
    %94 = vector.load %arg7[%c0_92, %c2_93] : memref<4x49xf32, #tpu.memory_space<vmem>>, vector<4x17xf32>
    %c1_94 = arith.constant 1 : index
    %c1_95 = arith.constant 1 : index
    %c0_96 = arith.constant 0 : index
    %c0_97 = arith.constant 0 : index
    %95 = vector.load %arg3[%c1_94, %c1_95, %c0_96, %c0_97] : memref<3x9x4x4xf32, #tpu.memory_space<vmem>>, vector<1x1x4x4xf32>
    %96 = vector.shape_cast %95 : vector<1x1x4x4xf32> to vector<4x4xf32>
    %cst_98 = arith.constant dense<0.000000e+00> : vector<4x17xf32>
    %97 = tpu.matmul %96, %94, %cst_98 {dimension_numbers = #tpu.dot_dimension_numbers<[1], [0], [0], [1], [0, 0, 1, 1], [], []>} : vector<4x4xf32>, vector<4x17xf32>, vector<4x17xf32> -> vector<4x17xf32>
    %98 = arith.addf %93, %97 : vector<4x17xf32>
    %c0_99 = arith.constant 0 : index
    %c4_100 = arith.constant 4 : index
    %99 = vector.load %arg7[%c0_99, %c4_100] : memref<4x49xf32, #tpu.memory_space<vmem>>, vector<4x17xf32>
    %c1_101 = arith.constant 1 : index
    %c2_102 = arith.constant 2 : index
    %c0_103 = arith.constant 0 : index
    %c0_104 = arith.constant 0 : index
    %100 = vector.load %arg3[%c1_101, %c2_102, %c0_103, %c0_104] : memref<3x9x4x4xf32, #tpu.memory_space<vmem>>, vector<1x1x4x4xf32>
    %101 = vector.shape_cast %100 : vector<1x1x4x4xf32> to vector<4x4xf32>
    %cst_105 = arith.constant dense<0.000000e+00> : vector<4x17xf32>
    %102 = tpu.matmul %101, %99, %cst_105 {dimension_numbers = #tpu.dot_dimension_numbers<[1], [0], [0], [1], [0, 0, 1, 1], [], []>} : vector<4x4xf32>, vector<4x17xf32>, vector<4x17xf32> -> vector<4x17xf32>
    %103 = arith.addf %98, %102 : vector<4x17xf32>
    %c0_106 = arith.constant 0 : index
    %c14 = arith.constant 14 : index
    %104 = vector.load %arg7[%c0_106, %c14] : memref<4x49xf32, #tpu.memory_space<vmem>>, vector<4x17xf32>
    %c1_107 = arith.constant 1 : index
    %c3_108 = arith.constant 3 : index
    %c0_109 = arith.constant 0 : index
    %c0_110 = arith.constant 0 : index
    %105 = vector.load %arg3[%c1_107, %c3_108, %c0_109, %c0_110] : memref<3x9x4x4xf32, #tpu.memory_space<vmem>>, vector<1x1x4x4xf32>
    %106 = vector.shape_cast %105 : vector<1x1x4x4xf32> to vector<4x4xf32>
    %cst_111 = arith.constant dense<0.000000e+00> : vector<4x17xf32>
    %107 = tpu.matmul %106, %104, %cst_111 {dimension_numbers = #tpu.dot_dimension_numbers<[1], [0], [0], [1], [0, 0, 1, 1], [], []>} : vector<4x4xf32>, vector<4x17xf32>, vector<4x17xf32> -> vector<4x17xf32>
    %108 = arith.addf %103, %107 : vector<4x17xf32>
    %c0_112 = arith.constant 0 : index
    %c16 = arith.constant 16 : index
    %109 = vector.load %arg7[%c0_112, %c16] : memref<4x49xf32, #tpu.memory_space<vmem>>, vector<4x17xf32>
    %c1_113 = arith.constant 1 : index
    %c4_114 = arith.constant 4 : index
    %c0_115 = arith.constant 0 : index
    %c0_116 = arith.constant 0 : index
    %110 = vector.load %arg3[%c1_113, %c4_114, %c0_115, %c0_116] : memref<3x9x4x4xf32, #tpu.memory_space<vmem>>, vector<1x1x4x4xf32>
    %111 = vector.shape_cast %110 : vector<1x1x4x4xf32> to vector<4x4xf32>
    %cst_117 = arith.constant dense<0.000000e+00> : vector<4x17xf32>
    %112 = tpu.matmul %111, %109, %cst_117 {dimension_numbers = #tpu.dot_dimension_numbers<[1], [0], [0], [1], [0, 0, 1, 1], [], []>} : vector<4x4xf32>, vector<4x17xf32>, vector<4x17xf32> -> vector<4x17xf32>
    %113 = arith.addf %108, %112 : vector<4x17xf32>
    %c0_118 = arith.constant 0 : index
    %c18_119 = arith.constant 18 : index
    %114 = vector.load %arg7[%c0_118, %c18_119] : memref<4x49xf32, #tpu.memory_space<vmem>>, vector<4x17xf32>
    %c1_120 = arith.constant 1 : index
    %c5_121 = arith.constant 5 : index
    %c0_122 = arith.constant 0 : index
    %c0_123 = arith.constant 0 : index
    %115 = vector.load %arg3[%c1_120, %c5_121, %c0_122, %c0_123] : memref<3x9x4x4xf32, #tpu.memory_space<vmem>>, vector<1x1x4x4xf32>
    %116 = vector.shape_cast %115 : vector<1x1x4x4xf32> to vector<4x4xf32>
    %cst_124 = arith.constant dense<0.000000e+00> : vector<4x17xf32>
    %117 = tpu.matmul %116, %114, %cst_124 {dimension_numbers = #tpu.dot_dimension_numbers<[1], [0], [0], [1], [0, 0, 1, 1], [], []>} : vector<4x4xf32>, vector<4x17xf32>, vector<4x17xf32> -> vector<4x17xf32>
    %118 = arith.addf %113, %117 : vector<4x17xf32>
    %c0_125 = arith.constant 0 : index
    %c28_126 = arith.constant 28 : index
    %119 = vector.load %arg7[%c0_125, %c28_126] : memref<4x49xf32, #tpu.memory_space<vmem>>, vector<4x17xf32>
    %c1_127 = arith.constant 1 : index
    %c6_128 = arith.constant 6 : index
    %c0_129 = arith.constant 0 : index
    %c0_130 = arith.constant 0 : index
    %120 = vector.load %arg3[%c1_127, %c6_128, %c0_129, %c0_130] : memref<3x9x4x4xf32, #tpu.memory_space<vmem>>, vector<1x1x4x4xf32>
    %121 = vector.shape_cast %120 : vector<1x1x4x4xf32> to vector<4x4xf32>
    %cst_131 = arith.constant dense<0.000000e+00> : vector<4x17xf32>
    %122 = tpu.matmul %121, %119, %cst_131 {dimension_numbers = #tpu.dot_dimension_numbers<[1], [0], [0], [1], [0, 0, 1, 1], [], []>} : vector<4x4xf32>, vector<4x17xf32>, vector<4x17xf32> -> vector<4x17xf32>
    %123 = arith.addf %118, %122 : vector<4x17xf32>
    %c0_132 = arith.constant 0 : index
    %c30 = arith.constant 30 : index
    %124 = vector.load %arg7[%c0_132, %c30] : memref<4x49xf32, #tpu.memory_space<vmem>>, vector<4x17xf32>
    %c1_133 = arith.constant 1 : index
    %c7_134 = arith.constant 7 : index
    %c0_135 = arith.constant 0 : index
    %c0_136 = arith.constant 0 : index
    %125 = vector.load %arg3[%c1_133, %c7_134, %c0_135, %c0_136] : memref<3x9x4x4xf32, #tpu.memory_space<vmem>>, vector<1x1x4x4xf32>
    %126 = vector.shape_cast %125 : vector<1x1x4x4xf32> to vector<4x4xf32>
    %cst_137 = arith.constant dense<0.000000e+00> : vector<4x17xf32>
    %127 = tpu.matmul %126, %124, %cst_137 {dimension_numbers = #tpu.dot_dimension_numbers<[1], [0], [0], [1], [0, 0, 1, 1], [], []>} : vector<4x4xf32>, vector<4x17xf32>, vector<4x17xf32> -> vector<4x17xf32>
    %128 = arith.addf %123, %127 : vector<4x17xf32>
    %c0_138 = arith.constant 0 : index
    %c32 = arith.constant 32 : index
    %129 = vector.load %arg7[%c0_138, %c32] : memref<4x49xf32, #tpu.memory_space<vmem>>, vector<4x17xf32>
    %c1_139 = arith.constant 1 : index
    %c8_140 = arith.constant 8 : index
    %c0_141 = arith.constant 0 : index
    %c0_142 = arith.constant 0 : index
    %130 = vector.load %arg3[%c1_139, %c8_140, %c0_141, %c0_142] : memref<3x9x4x4xf32, #tpu.memory_space<vmem>>, vector<1x1x4x4xf32>
    %131 = vector.shape_cast %130 : vector<1x1x4x4xf32> to vector<4x4xf32>
    %cst_143 = arith.constant dense<0.000000e+00> : vector<4x17xf32>
    %132 = tpu.matmul %131, %129, %cst_143 {dimension_numbers = #tpu.dot_dimension_numbers<[1], [0], [0], [1], [0, 0, 1, 1], [], []>} : vector<4x4xf32>, vector<4x17xf32>, vector<4x17xf32> -> vector<4x17xf32>
    %133 = arith.addf %128, %132 : vector<4x17xf32>
    %c2_144 = arith.constant 2 : index
    %c0_145 = arith.constant 0 : index
    %c0_146 = arith.constant 0 : index
    %134 = vector.load %arg4[%c2_144, %c0_145, %c0_146] : memref<6x4x1xf32, #tpu.memory_space<vmem>>, vector<1x4x1xf32>
    %135 = vector.shape_cast %134 : vector<1x4x1xf32> to vector<4x1xf32>
    %136 = vector.broadcast %135 : vector<4x1xf32> to vector<4x17xf32>
    %137 = arith.addf %133, %136 : vector<4x17xf32>
    %cst_147 = arith.constant 0.000000e+00 : f32
    %138 = vector.broadcast %cst_147 : f32 to vector<4x17xf32>
    %139 = arith.maximumf %137, %138 : vector<4x17xf32>
    %140 = vector.extract_strided_slice %139 {offsets = [0, 0], sizes = [4, 3], strides = [1, 1]} : vector<4x17xf32> to vector<4x3xf32>
    %c0_148 = arith.constant 0 : index
    %c6_149 = arith.constant 6 : index
    %141 = vector.load %arg8[%c0_148, %c6_149] : memref<4x25xf32, #tpu.memory_space<vmem>>, vector<4x3xf32>
    tpu.vector_store %arg8[%c0_148, %c6_149], %140 {strides = array<i32>} : memref<4x25xf32, #tpu.memory_space<vmem>>, vector<4x3xf32>,
    %142 = vector.extract_strided_slice %139 {offsets = [0, 7], sizes = [4, 3], strides = [1, 1]} : vector<4x17xf32> to vector<4x3xf32>
    %c0_150 = arith.constant 0 : index
    %c11 = arith.constant 11 : index
    %143 = vector.load %arg8[%c0_150, %c11] : memref<4x25xf32, #tpu.memory_space<vmem>>, vector<4x3xf32>
    tpu.vector_store %arg8[%c0_150, %c11], %142 {strides = array<i32>} : memref<4x25xf32, #tpu.memory_space<vmem>>, vector<4x3xf32>,
    %144 = vector.extract_strided_slice %139 {offsets = [0, 14], sizes = [4, 3], strides = [1, 1]} : vector<4x17xf32> to vector<4x3xf32>
    %c0_151 = arith.constant 0 : index
    %c16_152 = arith.constant 16 : index
    %145 = vector.load %arg8[%c0_151, %c16_152] : memref<4x25xf32, #tpu.memory_space<vmem>>, vector<4x3xf32>
    tpu.vector_store %arg8[%c0_151, %c16_152], %144 {strides = array<i32>} : memref<4x25xf32, #tpu.memory_space<vmem>>, vector<4x3xf32>,
    %c0_153 = arith.constant 0 : index
    %c0_154 = arith.constant 0 : index
    %146 = vector.load %arg8[%c0_153, %c0_154] : memref<4x25xf32, #tpu.memory_space<vmem>>, vector<4x1xf32>
    %c2_155 = arith.constant 2 : index
    %c0_156 = arith.constant 0 : index
    %c0_157 = arith.constant 0 : index
    %c0_158 = arith.constant 0 : index
    %147 = vector.load %arg3[%c2_155, %c0_156, %c0_157, %c0_158] : memref<3x9x4x4xf32, #tpu.memory_space<vmem>>, vector<1x1x4x4xf32>
    %148 = vector.shape_cast %147 : vector<1x1x4x4xf32> to vector<4x4xf32>
    %cst_159 = arith.constant dense<0.000000e+00> : vector<4x1xf32>
    %149 = tpu.matmul %148, %146, %cst_159 {dimension_numbers = #tpu.dot_dimension_numbers<[1], [0], [0], [1], [0, 0, 1, 1], [], []>} : vector<4x4xf32>, vector<4x1xf32>, vector<4x1xf32> -> vector<4x1xf32>
    %c0_160 = arith.constant 0 : index
    %c2_161 = arith.constant 2 : index
    %150 = vector.load %arg8[%c0_160, %c2_161] : memref<4x25xf32, #tpu.memory_space<vmem>>, vector<4x1xf32>
    %c2_162 = arith.constant 2 : index
    %c1_163 = arith.constant 1 : index
    %c0_164 = arith.constant 0 : index
    %c0_165 = arith.constant 0 : index
    %151 = vector.load %arg3[%c2_162, %c1_163, %c0_164, %c0_165] : memref<3x9x4x4xf32, #tpu.memory_space<vmem>>, vector<1x1x4x4xf32>
    %152 = vector.shape_cast %151 : vector<1x1x4x4xf32> to vector<4x4xf32>
    %cst_166 = arith.constant dense<0.000000e+00> : vector<4x1xf32>
    %153 = tpu.matmul %152, %150, %cst_166 {dimension_numbers = #tpu.dot_dimension_numbers<[1], [0], [0], [1], [0, 0, 1, 1], [], []>} : vector<4x4xf32>, vector<4x1xf32>, vector<4x1xf32> -> vector<4x1xf32>
    %154 = arith.addf %149, %153 : vector<4x1xf32>
    %c0_167 = arith.constant 0 : index
    %c4_168 = arith.constant 4 : index
    %155 = vector.load %arg8[%c0_167, %c4_168] : memref<4x25xf32, #tpu.memory_space<vmem>>, vector<4x1xf32>
    %c2_169 = arith.constant 2 : index
    %c2_170 = arith.constant 2 : index
    %c0_171 = arith.constant 0 : index
    %c0_172 = arith.constant 0 : index
    %156 = vector.load %arg3[%c2_169, %c2_170, %c0_171, %c0_172] : memref<3x9x4x4xf32, #tpu.memory_space<vmem>>, vector<1x1x4x4xf32>
    %157 = vector.shape_cast %156 : vector<1x1x4x4xf32> to vector<4x4xf32>
    %cst_173 = arith.constant dense<0.000000e+00> : vector<4x1xf32>
    %158 = tpu.matmul %157, %155, %cst_173 {dimension_numbers = #tpu.dot_dimension_numbers<[1], [0], [0], [1], [0, 0, 1, 1], [], []>} : vector<4x4xf32>, vector<4x1xf32>, vector<4x1xf32> -> vector<4x1xf32>
    %159 = arith.addf %154, %158 : vector<4x1xf32>
    %c0_174 = arith.constant 0 : index
    %c10_175 = arith.constant 10 : index
    %160 = vector.load %arg8[%c0_174, %c10_175] : memref<4x25xf32, #tpu.memory_space<vmem>>, vector<4x1xf32>
    %c2_176 = arith.constant 2 : index
    %c3_177 = arith.constant 3 : index
    %c0_178 = arith.constant 0 : index
    %c0_179 = arith.constant 0 : index
    %161 = vector.load %arg3[%c2_176, %c3_177, %c0_178, %c0_179] : memref<3x9x4x4xf32, #tpu.memory_space<vmem>>, vector<1x1x4x4xf32>
    %162 = vector.shape_cast %161 : vector<1x1x4x4xf32> to vector<4x4xf32>
    %cst_180 = arith.constant dense<0.000000e+00> : vector<4x1xf32>
    %163 = tpu.matmul %162, %160, %cst_180 {dimension_numbers = #tpu.dot_dimension_numbers<[1], [0], [0], [1], [0, 0, 1, 1], [], []>} : vector<4x4xf32>, vector<4x1xf32>, vector<4x1xf32> -> vector<4x1xf32>
    %164 = arith.addf %159, %163 : vector<4x1xf32>
    %c0_181 = arith.constant 0 : index
    %c12 = arith.constant 12 : index
    %165 = vector.load %arg8[%c0_181, %c12] : memref<4x25xf32, #tpu.memory_space<vmem>>, vector<4x1xf32>
    %c2_182 = arith.constant 2 : index
    %c4_183 = arith.constant 4 : index
    %c0_184 = arith.constant 0 : index
    %c0_185 = arith.constant 0 : index
    %166 = vector.load %arg3[%c2_182, %c4_183, %c0_184, %c0_185] : memref<3x9x4x4xf32, #tpu.memory_space<vmem>>, vector<1x1x4x4xf32>
    %167 = vector.shape_cast %166 : vector<1x1x4x4xf32> to vector<4x4xf32>
    %cst_186 = arith.constant dense<0.000000e+00> : vector<4x1xf32>
    %168 = tpu.matmul %167, %165, %cst_186 {dimension_numbers = #tpu.dot_dimension_numbers<[1], [0], [0], [1], [0, 0, 1, 1], [], []>} : vector<4x4xf32>, vector<4x1xf32>, vector<4x1xf32> -> vector<4x1xf32>
    %169 = arith.addf %164, %168 : vector<4x1xf32>
    %c0_187 = arith.constant 0 : index
    %c14_188 = arith.constant 14 : index
    %170 = vector.load %arg8[%c0_187, %c14_188] : memref<4x25xf32, #tpu.memory_space<vmem>>, vector<4x1xf32>
    %c2_189 = arith.constant 2 : index
    %c5_190 = arith.constant 5 : index
    %c0_191 = arith.constant 0 : index
    %c0_192 = arith.constant 0 : index
    %171 = vector.load %arg3[%c2_189, %c5_190, %c0_191, %c0_192] : memref<3x9x4x4xf32, #tpu.memory_space<vmem>>, vector<1x1x4x4xf32>
    %172 = vector.shape_cast %171 : vector<1x1x4x4xf32> to vector<4x4xf32>
    %cst_193 = arith.constant dense<0.000000e+00> : vector<4x1xf32>
    %173 = tpu.matmul %172, %170, %cst_193 {dimension_numbers = #tpu.dot_dimension_numbers<[1], [0], [0], [1], [0, 0, 1, 1], [], []>} : vector<4x4xf32>, vector<4x1xf32>, vector<4x1xf32> -> vector<4x1xf32>
    %174 = arith.addf %169, %173 : vector<4x1xf32>
    %c0_194 = arith.constant 0 : index
    %c20_195 = arith.constant 20 : index
    %175 = vector.load %arg8[%c0_194, %c20_195] : memref<4x25xf32, #tpu.memory_space<vmem>>, vector<4x1xf32>
    %c2_196 = arith.constant 2 : index
    %c6_197 = arith.constant 6 : index
    %c0_198 = arith.constant 0 : index
    %c0_199 = arith.constant 0 : index
    %176 = vector.load %arg3[%c2_196, %c6_197, %c0_198, %c0_199] : memref<3x9x4x4xf32, #tpu.memory_space<vmem>>, vector<1x1x4x4xf32>
    %177 = vector.shape_cast %176 : vector<1x1x4x4xf32> to vector<4x4xf32>
    %cst_200 = arith.constant dense<0.000000e+00> : vector<4x1xf32>
    %178 = tpu.matmul %177, %175, %cst_200 {dimension_numbers = #tpu.dot_dimension_numbers<[1], [0], [0], [1], [0, 0, 1, 1], [], []>} : vector<4x4xf32>, vector<4x1xf32>, vector<4x1xf32> -> vector<4x1xf32>
    %179 = arith.addf %174, %178 : vector<4x1xf32>
    %c0_201 = arith.constant 0 : index
    %c22_202 = arith.constant 22 : index
    %180 = vector.load %arg8[%c0_201, %c22_202] : memref<4x25xf32, #tpu.memory_space<vmem>>, vector<4x1xf32>
    %c2_203 = arith.constant 2 : index
    %c7_204 = arith.constant 7 : index
    %c0_205 = arith.constant 0 : index
    %c0_206 = arith.constant 0 : index
    %181 = vector.load %arg3[%c2_203, %c7_204, %c0_205, %c0_206] : memref<3x9x4x4xf32, #tpu.memory_space<vmem>>, vector<1x1x4x4xf32>
    %182 = vector.shape_cast %181 : vector<1x1x4x4xf32> to vector<4x4xf32>
    %cst_207 = arith.constant dense<0.000000e+00> : vector<4x1xf32>
    %183 = tpu.matmul %182, %180, %cst_207 {dimension_numbers = #tpu.dot_dimension_numbers<[1], [0], [0], [1], [0, 0, 1, 1], [], []>} : vector<4x4xf32>, vector<4x1xf32>, vector<4x1xf32> -> vector<4x1xf32>
    %184 = arith.addf %179, %183 : vector<4x1xf32>
    %c0_208 = arith.constant 0 : index
    %c24 = arith.constant 24 : index
    %185 = vector.load %arg8[%c0_208, %c24] : memref<4x25xf32, #tpu.memory_space<vmem>>, vector<4x1xf32>
    %c2_209 = arith.constant 2 : index
    %c8_210 = arith.constant 8 : index
    %c0_211 = arith.constant 0 : index
    %c0_212 = arith.constant 0 : index
    %186 = vector.load %arg3[%c2_209, %c8_210, %c0_211, %c0_212] : memref<3x9x4x4xf32, #tpu.memory_space<vmem>>, vector<1x1x4x4xf32>
    %187 = vector.shape_cast %186 : vector<1x1x4x4xf32> to vector<4x4xf32>
    %cst_213 = arith.constant dense<0.000000e+00> : vector<4x1xf32>
    %188 = tpu.matmul %187, %185, %cst_213 {dimension_numbers = #tpu.dot_dimension_numbers<[1], [0], [0], [1], [0, 0, 1, 1], [], []>} : vector<4x4xf32>, vector<4x1xf32>, vector<4x1xf32> -> vector<4x1xf32>
    %189 = arith.addf %184, %188 : vector<4x1xf32>
    %c3_214 = arith.constant 3 : index
    %c0_215 = arith.constant 0 : index
    %c0_216 = arith.constant 0 : index
    %190 = vector.load %arg4[%c3_214, %c0_215, %c0_216] : memref<6x4x1xf32, #tpu.memory_space<vmem>>, vector<1x4x1xf32>
    %191 = vector.shape_cast %190 : vector<1x4x1xf32> to vector<4x1xf32>
    %192 = arith.addf %189, %191 : vector<4x1xf32>
    %cst_217 = arith.constant 0.000000e+00 : f32
    %193 = vector.broadcast %cst_217 : f32 to vector<4x1xf32>
    %194 = arith.maximumf %192, %193 : vector<4x1xf32>
    %c4_218 = arith.constant 4 : index
    %c0_219 = arith.constant 0 : index
    %c0_220 = arith.constant 0 : index
    %195 = vector.load %arg4[%c4_218, %c0_219, %c0_220] : memref<6x4x1xf32, #tpu.memory_space<vmem>>, vector<1x4x1xf32>
    %196 = vector.shape_cast %195 : vector<1x4x1xf32> to vector<4x1xf32>
    %197 = arith.mulf %194, %196 : vector<4x1xf32>
    %cst_221 = arith.constant dense<0.000000e+00> : vector<1xf32>
    %198 = vector.multi_reduction <add>, %197, %cst_221 [0] : vector<4x1xf32> to vector<1xf32>
    %199 = vector.shape_cast %198 : vector<1xf32> to vector<1x1xf32>
    %c5_222 = arith.constant 5 : index
    %c0_223 = arith.constant 0 : index
    %c0_224 = arith.constant 0 : index
    %200 = vector.load %arg4[%c5_222, %c0_223, %c0_224] : memref<6x4x1xf32, #tpu.memory_space<vmem>>, vector<1x4x1xf32>
    %201 = vector.shape_cast %200 : vector<1x4x1xf32> to vector<4x1xf32>
    %202 = vector.extract_strided_slice %201 {offsets = [0, 0], sizes = [1, 1], strides = [1, 1]} : vector<4x1xf32> to vector<1x1xf32>
    %203 = arith.addf %199, %202 : vector<1x1xf32>
    %c0_225 = arith.constant 0 : index
    %c0_226 = arith.constant 0 : index
    %c0_227 = arith.constant 0 : index
    %204 = vector.load %arg5[%c0_225, %c0_226, %c0_227] : memref<1x1x1xf32, #tpu.memory_space<vmem>>, vector<1x1x1xf32>
    %205 = vector.shape_cast %204 : vector<1x1x1xf32> to vector<1x1xf32>
    %206 = vector.shape_cast %203 : vector<1x1xf32> to vector<1x1x1xf32>
    tpu.vector_store %arg5[%c0_225, %c0_226, %c0_227], %206 {strides = array<i32>} : memref<1x1x1xf32, #tpu.memory_space<vmem>>, vector<1x1x1xf32>,
    return
  }
  func.func @transform_0(%arg0: i32) -> (i32, i32, i32) {
    %c0_i32 = arith.constant 0 : i32
    %c0_i32_0 = arith.constant 0 : i32
    %c0_i32_1 = arith.constant 0 : i32
    return %arg0, %c0_i32, %c0_i32_0 : i32, i32, i32
  }
  func.func @transform_1(%arg0: i32) -> (i32, i32) {
    %c0_i32 = arith.constant 0 : i32
    %c0_i32_0 = arith.constant 0 : i32
    %c0_i32_1 = arith.constant 0 : i32
    return %c0_i32, %c0_i32_0 : i32, i32
  }
  func.func @transform_2(%arg0: i32) -> (i32, i32, i32, i32) {
    %c0_i32 = arith.constant 0 : i32
    %c0_i32_0 = arith.constant 0 : i32
    %c0_i32_1 = arith.constant 0 : i32
    %c0_i32_2 = arith.constant 0 : i32
    %c0_i32_3 = arith.constant 0 : i32
    return %c0_i32, %c0_i32_0, %c0_i32_1, %c0_i32_2 : i32, i32, i32, i32
  }
  func.func @transform_3(%arg0: i32) -> (i32, i32, i32) {
    %c0_i32 = arith.constant 0 : i32
    %c0_i32_0 = arith.constant 0 : i32
    %c0_i32_1 = arith.constant 0 : i32
    %c0_i32_2 = arith.constant 0 : i32
    return %c0_i32, %c0_i32_0, %c0_i32_1 : i32, i32, i32
  }
  func.func @transform_4(%arg0: i32) -> (i32, i32, i32) {
    %c0_i32 = arith.constant 0 : i32
    %c0_i32_0 = arith.constant 0 : i32
    %c0_i32_1 = arith.constant 0 : i32
    return %arg0, %c0_i32, %c0_i32_0 : i32, i32, i32
  }
}

</mosaic_0001>

<bundles_post_ra>
// kernel: tpu_custom_call.1
= control target key start
LH: loop header
LB: loop body
LE: loop exit
PB: predicated region body
PF: predicated region fallthrough
CT: control target
= control target key end

     0   :  { %s3035_s15 = smov 0   ;;  %s3318_s0 = inlined_call_operand.vmem [shape: f32[2,64,49], index: 0, kind: input, shape index: {}]   ;;  %s3319_s1 = inlined_call_operand.vmem [shape: f32[4,64], index: 1, kind: input, shape index: {}]   ;;  %s3320_s2 = inlined_call_operand.vmem [shape: f32[3,9,4,4], index: 2, kind: input, shape index: {}]   ;;  %s3321_s3 = inlined_call_operand.vmem [shape: f32[6,4,1], index: 3, kind: input, shape index: {}]   ;;  %s3322_s4 = inlined_call_operand.vmem [shape: f32[2,1,1], index: 4, kind: output, shape index: {}]  }
   0x1 LB: > { %s2605_s16 = sadd.s32 4294967295, %s2977_s15   ;;  %p2609_p0 = scmp.ge.s32.totalorder %s2977_s15, 1  ;;  %s2977_s15 = sphi %s3035_s15, %s14_s15  }
   0x2   : > { %p162_p1 = scmp.lt.s32.totalorder %s2977_s15, 3 }
   0x4   : > { %p163_p2 = pnand %p2609_p0, %p162_p1 }
   0x5   : > { %p186_p3 = scmp.lt.s32.totalorder (!%p163_p2), %s2605_s16, 1  ;;  %v2979_v0 = vmov (!%p163_p2), 0.0|0.0   ;;  %vm2980_vm0 = vmmov (!%p163_p2), 0   ;;  %v2981_v1 = vmov (!%p163_p2), 0.0   ;;  %v209_v2 = vld [vmem:[%s3321_s3] sm:$0xf] (!%p163_p2) }
   0x6   : > { %166 = sbr.rel (%p163_p2) target bundleno = 1717 (0x6b5), region = 36  ;;  %2918 = vmatprep.subr.bf16.mxu0 (!%p163_p2), %v2979_v0  ;;  %2780 = vmatprep.mubr.msk.f32.mxu0 (!%p163_p2), %vm2980_vm0, %v2981_v1  ;;  %v2982_v3 = vmov (!%p163_p2), 0   ;;  %v200_v16 = vld [vmem:[%s3319_s1] sm:$0xf] (!%p163_p2)  ;;  %vm215_vm1 = vcmask (!%p163_p2), 523264   ;;  %vm194_vm2 = vcmask (!%p163_p2), 658432  }
   0x7   : > { %2969 = vset.pattern.permute.xlu0 (!%p163_p2), %v2982_v3  ;;  %2783 = vmatprep.subr.mxu1 (!%p163_p2), %v2981_v1  ;;  %195 = vst.msk [vmem:[#allocation2] sm:$0xf] (!%p163_p2), %vm194_vm2, %v2981_v1  ;;  %s2983_s25 = smov (!%p163_p2), 12   ;;  %s2984_s26 = smov (!%p163_p2), 10   ;;  %vm294_vm3 = vcmask (!%p163_p2), 134224   ;;  %vm299_vm4 = vcmask (!%p163_p2), 208024  }
   0x8   : > { %212 = vperm.xlu0 (!%p163_p2), %2969, %v209_v2   ;;  %2785 = vmatprep.mubr.msk.f32.mxu1 (!%p163_p2), %vm2980_vm0, %v2981_v1  ;;  %s2985_s27 = smov (!%p163_p2), 14   ;;  %s2986_s28 = smov (!%p163_p2), 16   ;;  %vm304_vm5 = vcmask (!%p163_p2), 281824   ;;  %vm309_vm6 = vcmask (!%p163_p2), 355624   ;;  %vm314_vm7 = vcmask (!%p163_p2), 429424   ;;  %vm319_vm8 = vcmask (!%p163_p2), 503224  }
   0x9   : > { %2970 = vset.pattern.permute.xlu1 (!%p163_p2), %v2982_v3  ;;  %s2987_s29 = smov (!%p163_p2), 18   ;;  %s2988_s30 = smov (!%p163_p2), 20   ;;  %vm324_vm9 = vcmask (!%p163_p2), 577024   ;;  %v2639_v30 = vld [vmem:[%s3321_s3 + $0x4] sm:$0xf] (!%p163_p2)  ;;  %vm337_vm10 = vcmask (!%p163_p2), 1043456  }
   0xa   : > { %s2989_s5 = smov (!%p163_p2), 22   ;;  %s2990_s6 = smov (!%p163_p2), 124   ;;  %v2613_v31 = vld [vmem:[%s3320_s2 + $0x4] sm:$0xf] (!%p163_p2)  ;;  %vm333_vm11 = vcmask (!%p163_p2), 31744   ;;  %vm196_vm12 = vcmask (!%p163_p2), 396288  }
   0xb   : > { %s2991_s7 = smov (!%p163_p2), 126   ;;  %s2992_s8 = smov (!%p163_p2), 108   ;;  %v327_v33 = vld [vmem:[%s3320_s2] sm:$0xf] (!%p163_p2)  ;;  %v2618_v36 = vld [vmem:[%s3320_s2 + $0x8] sm:$0xf] (!%p163_p2) }
   0xc   : > { %s2993_s9 = smov (!%p163_p2), 110   ;;  %s2994_s10 = smov (!%p163_p2), 92   ;;  %v2627_v38 = vld [vmem:[%s3320_s2 + $0x14] sm:$0xf] (!%p163_p2)  ;;  %v2621_v40 = vld [vmem:[%s3320_s2 + $0xc] sm:$0xf] (!%p163_p2) }
   0xd   : > { %s3324_s16 = smov (!%p186_p3, %s2605_s16), 1  ;;  %s2995_s11 = smov 106   ;;  %v2633_v42 = vld [vmem:[%s3320_s2 + $0x1c] sm:$0xf]  ;;  %v2624_v43 = vld [vmem:[%s3320_s2 + $0x10] sm:$0xf] }
   0xe   : > { %s2700_s19 = sshll.u32 %s3324_s16, 6  ;;  %s2996_s12 = smov 88   ;;  %v2630_v45 = vld [vmem:[%s3320_s2 + $0x18] sm:$0xf]  ;;  %v2636_v47 = vld [vmem:[%s3320_s2 + $0x20] sm:$0xf] }
   0xf   : > { %s190_s22 = scalar_lea.vmem %s3318_s0, %s2700_s19  ;;  %s2997_s13 = smov 90   ;;  %197 = vst.msk [vmem:[#allocation3] sm:$0xf] %vm196_vm12, %v2981_v1  ;;  %vm1058_vm13 = vcmask 101440   ;;  %vm1063_vm14 = vcmask 158840   ;;  %vm1068_vm15 = vcmask 216240  }
  0x10   : > { %v201_v4 = vld [vmem:[%s190_s22] sm:$0xff]  ;;  %v202_v5 = vld [vmem:[%s190_s22 + $0x8] sm:$0xff]  ;;  %v203_v6 = vld [vmem:[%s190_s22 + $0x10] sm:$0xff]  ;;  %s2998_s17 = smov 6   ;;  %s2999_s18 = smov 8   ;;  %vm1075_vm2 = vcmask 331040  }
  0x11   : > { %v2919_v7 = vpack.c.bf16 %v202_v5, %v201_v4  ;;  %v204_v8 = vld [vmem:[%s190_s22 + $0x18] sm:$0xff]  ;;  %v205_v10 = vld [vmem:[%s190_s22 + $0x20] sm:$0xff]  ;;  %v206_v11 = vld [vmem:[%s190_s22 + $0x28] sm:$0xff]  ;;  %s3000_s19 = smov 2   ;;  %s3001_s20 = smov 4  }
  0x12   : > { %v2922_v9 = vpack.c.bf16 %v204_v8, %v203_v6  ;;  %v2925_v12 = vpack.c.bf16 %v206_v11, %v205_v10  ;;  %v207_v13 = vld [vmem:[%s190_s22 + $0x30] sm:$0xff]  ;;  %v208_v14 = vld [vmem:[%s190_s22 + $0x38] sm:$0xff]  ;;  %s3002_s23 = smov 112   ;;  %s3003_s24 = smov 114  }
  0x13   : > { %2920 = vmatpush3.bf16.msra.mxu0 %v2919_v7  ;;  %v2928_v15 = vpack.c.bf16 %v208_v14, %v207_v13 }
  0x14   : > { %2921 = vmatprep.subr.bf16.mxu0 %v2979_v0 }
  0x17   : > { %2923 = vmatpush3.bf16.msra.mxu0 %v2922_v9 }
  0x18   : > { %2924 = vmatprep.subr.bf16.mxu0 %v2979_v0 }
  0x1b   : > { %2926 = vmatpush3.bf16.msra.mxu0 %v2925_v12 }
  0x1c   : > { %2927 = vmatprep.subr.bf16.mxu0 %v2979_v0 }
  0x1f   : > { %2929 = vmatpush3.bf16.msra.mxu0 %v2928_v15 }
  0x20   : > { %2808 = vmatprep.subr.mxu0 %v2981_v1 }
  0x22   : > { %2781 = vmatmul.mubr.msk.f32.vlgmr.msra.gmra.mrb[0].mxu0 %vm215_vm1, %v200_v16  ;;  %vm1073_vm1 = vcmask 273640  }
  0x23   : > { %2810 = vmatprep.mubr.msk.f32.mxu0 %vm2980_vm0, %v2981_v1 }
  0x87   : > { %v213_v17 = vpop.permute.xlu0 %212 }
  0xf5   : > { %v285_v18 = vpop.f32.mrb[0].mxu0 }
  0xf6   : > { %v286_v19 = vadd.f32 %v285_v18, %v213_v17  ;;  %v2782_v20 = vpop.f32.mrb[1].mxu0 }
  0xf7   : > { %v2667_v20 = vld [vmem:[%s3321_s3 + $0x8] sm:$0xf] }
  0xf8   : > { %v289_v21 = vmax.f32 %v286_v19, 0.0  ;;  %v2640_v19 = vld [vmem:[%s3320_s2 + $0x24] sm:$0xf] }
  0xfa   : > { %296 = vrot.lane.b32.xlu1 %v289_v21, %s2983_s25  ;;  %291 = vrot.lane.b32.xlu0 %v289_v21, %s2984_s26  ;;  %s3004_s25 = smov 100   ;;  %s3005_s26 = smov 96  }
  0xfe   : > { %301 = vrot.lane.b32.xlu1 %v289_v21, %s2985_s27  ;;  %306 = vrot.lane.b32.xlu0 %v289_v21, %s2986_s28  ;;  %s3006_s27 = smov 98  }
 0x102   : > { %311 = vrot.lane.b32.xlu1 %v289_v21, %s2987_s29  ;;  %316 = vrot.lane.b32.xlu0 %v289_v21, %s2988_s30 }
 0x106   : > { %321 = vrot.lane.b32.xlu1 %v289_v21, %s2989_s5  ;;  %v2641_v21 = vld [vmem:[%s3320_s2 + $0x28] sm:$0xf] }
 0x16c   : > { %v297_v22 = vpop.permute.xlu1 %296  ;;  %v292_v23 = vpop.permute.xlu0 %291 }
 0x16d   : > { %295 = vst.msk [vmem:[#allocation2] sm:$0xf] %vm294_vm3, %v292_v23  ;;  %vm198_vm3 = vcmask 199680  }
 0x16e   : > { %300 = vst.msk [vmem:[#allocation2] sm:$0xf] %vm299_vm4, %v297_v22  ;;  %vm1808_vm4 = vcmask 68656  }
 0x16f   : > { %199 = vst.msk [vmem:[#allocation4] sm:$0xf] %vm198_vm3, %v2981_v1 }
 0x170   : > { %v302_v24 = vpop.permute.xlu1 %301  ;;  %v307_v25 = vpop.permute.xlu0 %306 }
 0x171   : > { %305 = vst.msk [vmem:[#allocation2] sm:$0xf] %vm304_vm5, %v302_v24  ;;  %v2646_v24 = vld [vmem:[%s3320_s2 + $0x2c] sm:$0xf]  ;;  %vm1813_vm5 = vcmask 109656  }
 0x172   : > { %310 = vst.msk [vmem:[#allocation2] sm:$0xf] %vm309_vm6, %v307_v25  ;;  %v2649_v25 = vld [vmem:[%s3320_s2 + $0x30] sm:$0xf]  ;;  %vm1818_vm6 = vcmask 150656  }
 0x174   : > { %v312_v26 = vpop.permute.xlu1 %311  ;;  %v317_v27 = vpop.permute.xlu0 %316 }
 0x175   : > { %315 = vst.msk [vmem:[#allocation2] sm:$0xf] %vm314_vm7, %v312_v26  ;;  %vm2556_vm7 = vcmask 0  }
 0x176   : > { %320 = vst.msk [vmem:[#allocation2] sm:$0xf] %vm319_vm8, %v317_v27 }
 0x178   : > { %v322_v28 = vpop.permute.xlu1 %321 }
 0x179   : > { %325 = vst.msk [vmem:[#allocation2] sm:$0xf] %vm324_vm9, %v322_v28  ;;  %v2652_v28 = vld [vmem:[%s3320_s2 + $0x34] sm:$0xf] }
 0x180   : > { %v326_v29 = vld [vmem:[#allocation2] sm:$0xf] }
 0x181   : > { %487 = vrot.lane.b32.xlu1 %v326_v29, %s2990_s6  ;;  %331 = vrot.lane.b32.xlu0 %v326_v29, %s2991_s7 }
 0x185   : > { %647 = vrot.lane.b32.xlu1 %v326_v29, %s2992_s8  ;;  %567 = vrot.lane.b32.xlu0 %v326_v29, %s2993_s9 }
 0x189   : > { %807 = vrot.lane.b32.xlu1 %v326_v29, %s2994_s10  ;;  %727 = vrot.lane.b32.xlu0 %v326_v29, %s2995_s11 }
 0x18d   : > { %967 = vrot.lane.b32.xlu1 %v326_v29, %s2996_s12  ;;  %887 = vrot.lane.b32.xlu0 %v326_v29, %s2997_s13 }
 0x191   : > { %1049 = vperm.xlu0 %2969, %v2639_v30  }
 0x1f3   : > { %v332_v32 = vpop.permute.xlu0 %331  ;;  %v488_v34 = vpop.permute.xlu1 %487 }
 0x1f4   : > { %2784 = vmatpush3.msk.msra.mxu1 %vm337_vm10, %v332_v32  ;;  %v2658_v32 = vld [vmem:[%s3320_s2 + $0x3c] sm:$0xf] }
 0x1f5   : > { %2786 = vmatmul.mubr.msk.f32.vlgmr.msra.gmra.mrb[0].mxu1 %vm333_vm11, %v2613_v31  ;;  %2788 = vmatprep.subr.mxu1 %v2981_v1 }
 0x1f6   : > { %2789 = vmatpush3.msk.msra.mxu1 %vm337_vm10, %v326_v29  ;;  %2790 = vmatprep.mubr.msk.f32.mxu1 %vm2980_vm0, %v2981_v1  ;;  %v2655_v29 = vld [vmem:[%s3320_s2 + $0x38] sm:$0xf] }
 0x1f7   : > { %v568_v35 = vpop.permute.xlu0 %567  ;;  %2793 = vmatprep.subr.mxu1 %v2981_v1  ;;  %v648_v39 = vpop.permute.xlu1 %647 }
 0x1f9   : > { %2791 = vmatmul.mubr.msk.f32.vlgmr.msra.gmra.mrb[2].mxu1 %vm333_vm11, %v327_v33  ;;  %v2661_v33 = vld [vmem:[%s3320_s2 + $0x40] sm:$0xf] }
 0x1fa   : > { %2794 = vmatpush3.msk.msra.mxu1 %vm337_vm10, %v488_v34  ;;  %2795 = vmatprep.mubr.msk.f32.mxu1 %vm2980_vm0, %v2981_v1 }
 0x1fb   : > { %v728_v37 = vpop.permute.xlu0 %727  ;;  %2798 = vmatprep.subr.mxu1 %v2981_v1  ;;  %v808_v44 = vpop.permute.xlu1 %807 }
 0x1fc   : > { %2809 = vmatpush3.msk.msra.mxu0 %vm337_vm10, %v728_v37 }
 0x1fd   : > { %2796 = vmatmul.mubr.msk.f32.vlgmr.msra.gmra.mrb[4].mxu1 %vm333_vm11, %v2618_v36  ;;  %2818 = vmatprep.subr.mxu0 %v2981_v1  ;;  %v2664_v36 = vld [vmem:[%s3320_s2 + $0x44] sm:$0xf] }
 0x1fe   : > { %2799 = vmatpush3.msk.msra.mxu1 %vm337_vm10, %v568_v35  ;;  %2800 = vmatprep.mubr.msk.f32.mxu1 %vm2980_vm0, %v2981_v1 }
 0x1ff   : > { %v888_v41 = vpop.permute.xlu0 %887  ;;  %2803 = vmatprep.subr.mxu1 %v2981_v1  ;;  %2811 = vmatmul.mubr.msk.f32.vlgmr.msra.gmra.mrb[2].mxu0 %vm333_vm11, %v2627_v38  ;;  %v968_v46 = vpop.permute.xlu1 %967 }
 0x200   : > { %2819 = vmatpush3.msk.msra.mxu0 %vm337_vm10, %v888_v41  ;;  %2820 = vmatprep.mubr.msk.f32.mxu0 %vm2980_vm0, %v2981_v1 }
 0x201   : > { %2801 = vmatmul.mubr.msk.f32.vlgmr.msra.gmra.mrb[6].mxu1 %vm333_vm11, %v2621_v40  ;;  %2828 = vmatprep.subr.mxu0 %v2981_v1 }
 0x202   : > { %2804 = vmatpush3.msk.msra.mxu1 %vm337_vm10, %v648_v39  ;;  %2805 = vmatprep.mubr.msk.f32.mxu1 %vm2980_vm0, %v2981_v1 }
 0x203   : > { %2813 = vmatprep.subr.mxu1 %v2981_v1  ;;  %2821 = vmatmul.mubr.msk.f32.vlgmr.msra.gmra.mrb[4].mxu0 %vm333_vm11, %v2633_v42 }
 0x204   : > { %2830 = vmatprep.mubr.msk.f32.mxu0 %vm2980_vm0, %v2981_v1 }
 0x205   : > { %2806 = vmatmul.mubr.msk.f32.vlgmr.msra.gmra.mrb[8].mxu1 %vm333_vm11, %v2624_v43 }
 0x206   : > { %2814 = vmatpush3.msk.msra.mxu1 %vm337_vm10, %v808_v44  ;;  %2815 = vmatprep.mubr.msk.f32.mxu1 %vm2980_vm0, %v2981_v1 }
 0x207   : > { %2823 = vmatprep.subr.mxu1 %v2981_v1 }
 0x209   : > { %2816 = vmatmul.mubr.msk.f32.vlgmr.msra.gmra.mrb[10].mxu1 %vm333_vm11, %v2630_v45 }
 0x20a   : > { %2824 = vmatpush3.msk.msra.mxu1 %vm337_vm10, %v968_v46  ;;  %2825 = vmatprep.mubr.msk.f32.mxu1 %vm2980_vm0, %v2981_v1 }
 0x20b   : > { %2833 = vmatprep.subr.mxu1 %v2981_v1 }
 0x20d   : > { %2826 = vmatmul.mubr.msk.f32.vlgmr.msra.gmra.mrb[12].mxu1 %vm333_vm11, %v2636_v47 }
 0x20e   : > { %2835 = vmatprep.mubr.msk.f32.mxu1 %vm2980_vm0, %v2981_v1 }
 0x210   : > { %v1050_v11 = vpop.permute.xlu0 %1049 }
 0x2c8   : > { %v406_v48 = vpop.f32.mrb[0].mxu1 }
 0x2c9   : > { %v2787_v49 = vpop.f32.mrb[1].mxu1 }
 0x2cc   : > { %v481_v50 = vpop.f32.mrb[2].mxu1 }
 0x2cd   : > { %v482_v51 = vadd.f32 %v481_v50, %v406_v48  ;;  %v2792_v52 = vpop.f32.mrb[3].mxu1 }
 0x2d0   : > { %v560_v53 = vpop.f32.mrb[4].mxu1 }
 0x2d1   : > { %v564_v54 = vadd.f32 %v560_v53, %v482_v51  ;;  %v2797_v55 = vpop.f32.mrb[5].mxu1 }
 0x2d2   : > { %v800_v56 = vpop.f32.mrb[2].mxu0 }
 0x2d3   : > { %v2812_v57 = vpop.f32.mrb[3].mxu0 }
 0x2d4   : > { %v640_v58 = vpop.f32.mrb[6].mxu1 }
 0x2d5   : > { %v644_v59 = vadd.f32 %v640_v58, %v564_v54  ;;  %v2802_v60 = vpop.f32.mrb[7].mxu1 }
 0x2d6   : > { %v960_v61 = vpop.f32.mrb[4].mxu0 }
 0x2d7   : > { %v2822_v62 = vpop.f32.mrb[5].mxu0 }
 0x2d8   : > { %v720_v63 = vpop.f32.mrb[8].mxu1 }
 0x2d9   : > { %v724_v0 = vadd.f32 %v720_v63, %v644_v59  ;;  %v2807_v2 = vpop.f32.mrb[9].mxu1 }
 0x2db   : > { %v804_v3 = vadd.f32 %v800_v56, %v724_v0 }
 0x2dc   : > { %v880_v4 = vpop.f32.mrb[10].mxu1 }
 0x2dd   : > { %v884_v5 = vadd.f32 %v880_v4, %v804_v3  ;;  %v2817_v6 = vpop.f32.mrb[11].mxu1 }
 0x2df   : > { %v964_v7 = vadd.f32 %v960_v61, %v884_v5 }
 0x2e0   : > { %v1040_v8 = vpop.f32.mrb[12].mxu1 }
 0x2e1   : > { %v1044_v9 = vadd.f32 %v1040_v8, %v964_v7  ;;  %v2827_v10 = vpop.f32.mrb[13].mxu1  ;;  %v2668_v7 = vld [vmem:[%s3320_s2 + $0x48] sm:$0xf]  ;;  %v2669_v8 = vld [vmem:[%s3320_s2 + $0x4c] sm:$0xf] }
 0x2e3   : > { %v1052_v12 = vadd.f32 %v1050_v11, %v1044_v9  ;;  %v2674_v11 = vld [vmem:[%s3320_s2 + $0x50] sm:$0xf] }
 0x2e5   : > { %v1053_v13 = vmax.f32 %v1052_v12, 0.0  ;;  %v2677_v12 = vld [vmem:[%s3320_s2 + $0x54] sm:$0xf] }
 0x2e7   : > { %1060 = vrot.lane.b32.xlu0 %v1053_v13, %s2998_s17  ;;  %1055 = vrot.lane.b32.xlu1 %v1053_v13, %s2999_s18 }
 0x2eb   : > { %1070 = vrot.lane.b32.xlu0 %v1053_v13, %s3000_s19  ;;  %1065 = vrot.lane.b32.xlu1 %v1053_v13, %s3001_s20 }
 0x359   : > { %v1061_v14 = vpop.permute.xlu0 %1060  ;;  %v1056_v15 = vpop.permute.xlu1 %1055 }
 0x35a   : > { %1059 = vst.msk [vmem:[#allocation3] sm:$0xf] %vm1058_vm13, %v1056_v15  ;;  %v2680_v15 = vld [vmem:[%s3320_s2 + $0x58] sm:$0xf] }
 0x35b   : > { %1064 = vst.msk [vmem:[#allocation3] sm:$0xf] %vm1063_vm14, %v1061_v14 }
 0x35d   : > { %v1071_v16 = vpop.permute.xlu0 %1070  ;;  %v1066_v17 = vpop.permute.xlu1 %1065 }
 0x35e   : > { %1069 = vst.msk [vmem:[#allocation3] sm:$0xf] %vm1068_vm15, %v1066_v17 }
 0x35f   : > { %1074 = vst.msk [vmem:[#allocation3] sm:$0xf] %vm1073_vm1, %v1071_v16  ;;  %v2683_v16 = vld [vmem:[%s3320_s2 + $0x5c] sm:$0xf] }
 0x360   : > { %1076 = vst.msk [vmem:[#allocation3] sm:$0xf] %vm1075_vm2, %v1053_v13 }
 0x367   : > { %v1077_v18 = vld [vmem:[#allocation3] sm:$0xf] }
 0x368   : > { %1237 = vrot.lane.b32.xlu0 %v1077_v18, %s2990_s6  ;;  %1083 = vrot.lane.b32.xlu1 %v1077_v18, %s2991_s7 }
 0x369   : > { %2834 = vmatpush3.msk.msra.mxu1 %vm337_vm10, %v1077_v18 }
 0x36a   : > { %2836 = vmatmul.mubr.msk.f32.vlgmr.msra.gmra.mrb[14].mxu1 %vm333_vm11, %v2640_v19  ;;  %2843 = vmatprep.subr.mxu1 %v2981_v1  ;;  %v2686_v19 = vld [vmem:[%s3320_s2 + $0x60] sm:$0xf] }
 0x36b   : > { %2845 = vmatprep.mubr.msk.f32.mxu1 %vm2980_vm0, %v2981_v1 }
 0x36c   : > { %1397 = vrot.lane.b32.xlu0 %v1077_v18, %s3002_s23  ;;  %1317 = vrot.lane.b32.xlu1 %v1077_v18, %s3003_s24 }
 0x370   : > { %1557 = vrot.lane.b32.xlu0 %v1077_v18, %s3004_s25  ;;  %1477 = vrot.lane.b32.xlu1 %v1077_v18, %s2993_s9 }
 0x374   : > { %1717 = vrot.lane.b32.xlu0 %v1077_v18, %s3005_s26  ;;  %1637 = vrot.lane.b32.xlu1 %v1077_v18, %s3006_s27 }
 0x378   : > { %1799 = vperm.xlu1 %2970, %v2667_v20   ;;  %v2689_v20 = vld [vmem:[%s3320_s2 + $0x64] sm:$0xf] }
 0x3da   : > { %v1238_v22 = vpop.permute.xlu0 %1237  ;;  %v1084_v23 = vpop.permute.xlu1 %1083 }
 0x3db   : > { %2829 = vmatpush3.msk.msra.mxu0 %vm337_vm10, %v1084_v23  ;;  %v2692_v23 = vld [vmem:[%s3320_s2 + $0x68] sm:$0xf] }
 0x3dc   : > { %2831 = vmatmul.mubr.msk.f32.vlgmr.msra.gmra.mrb[6].mxu0 %vm333_vm11, %v2641_v21  ;;  %2838 = vmatprep.subr.mxu0 %v2981_v1 }
 0x3dd   : > { %2839 = vmatpush3.msk.msra.mxu0 %vm337_vm10, %v1238_v22  ;;  %2840 = vmatprep.mubr.msk.f32.mxu0 %vm2980_vm0, %v2981_v1 }
 0x3de   : > { %v1398_v26 = vpop.permute.xlu0 %1397  ;;  %v1318_v27 = vpop.permute.xlu1 %1317  ;;  %2848 = vmatprep.subr.mxu0 %v2981_v1 }
 0x3df   : > { %2844 = vmatpush3.msk.msra.mxu1 %vm337_vm10, %v1318_v27 }
 0x3e0   : > { %2841 = vmatmul.mubr.msk.f32.vlgmr.msra.gmra.mrb[8].mxu0 %vm333_vm11, %v2646_v24  ;;  %2846 = vmatmul.mubr.msk.f32.vlgmr.msra.gmra.mrb[16].mxu1 %vm333_vm11, %v2649_v25 }
 0x3e1   : > { %2849 = vmatpush3.msk.msra.mxu0 %vm337_vm10, %v1398_v26  ;;  %2853 = vmatprep.subr.mxu1 %v2981_v1 }
 0x3e2   : > { %v1558_v30 = vpop.permute.xlu0 %1557  ;;  %v1478_v31 = vpop.permute.xlu1 %1477  ;;  %2850 = vmatprep.mubr.msk.f32.mxu0 %vm2980_vm0, %v2981_v1  ;;  %2858 = vmatprep.subr.mxu0 %v2981_v1 }
 0x3e3   : > { %2854 = vmatpush3.msk.msra.mxu1 %vm337_vm10, %v1478_v31  ;;  %2855 = vmatprep.mubr.msk.f32.mxu1 %vm2980_vm0, %v2981_v1 }
 0x3e4   : > { %2851 = vmatmul.mubr.msk.f32.vlgmr.msra.gmra.mrb[10].mxu0 %vm333_vm11, %v2652_v28  ;;  %2856 = vmatmul.mubr.msk.f32.vlgmr.msra.gmra.mrb[18].mxu1 %vm333_vm11, %v2655_v29 }
 0x3e5   : > { %2859 = vmatpush3.msk.msra.mxu0 %vm337_vm10, %v1558_v30  ;;  %2863 = vmatprep.subr.mxu1 %v2981_v1 }
 0x3e6   : > { %v1718_v34 = vpop.permute.xlu0 %1717  ;;  %v1638_v35 = vpop.permute.xlu1 %1637  ;;  %2860 = vmatprep.mubr.msk.f32.mxu0 %vm2980_vm0, %v2981_v1  ;;  %2868 = vmatprep.subr.mxu0 %v2981_v1 }
 0x3e7   : > { %2864 = vmatpush3.msk.msra.mxu1 %vm337_vm10, %v1638_v35  ;;  %2865 = vmatprep.mubr.msk.f32.mxu1 %vm2980_vm0, %v2981_v1 }
 0x3e8   : > { %2861 = vmatmul.mubr.msk.f32.vlgmr.msra.gmra.mrb[12].mxu0 %vm333_vm11, %v2658_v32  ;;  %2866 = vmatmul.mubr.msk.f32.vlgmr.msra.gmra.mrb[20].mxu1 %vm333_vm11, %v2661_v33 }
 0x3e9   : > { %2869 = vmatpush3.msk.msra.mxu0 %vm337_vm10, %v1718_v34  ;;  %2870 = vmatprep.mubr.msk.f32.mxu0 %vm2980_vm0, %v2981_v1 }
 0x3ea   : > { %2878 = vmatprep.subr.mxu0 %v2981_v1  ;;  %2873 = vmatprep.subr.mxu1 %v2981_v1 }
 0x3eb   : > { %2875 = vmatprep.mubr.msk.f32.mxu1 %vm2980_vm0, %v2981_v1 }
 0x3ec   : > { %2871 = vmatmul.mubr.msk.f32.vlgmr.msra.gmra.mrb[14].mxu0 %vm333_vm11, %v2664_v36 }
 0x3ed   : > { %2880 = vmatprep.mubr.msk.f32.mxu0 %vm2980_vm0, %v2981_v1 }
 0x3f7   : > { %v1800_v61 = vpop.permute.xlu1 %1799 }
 0x43d   : > { %v1231_v37 = vpop.f32.mrb[14].mxu1 }
 0x43e   : > { %v2837_v38 = vpop.f32.mrb[15].mxu1 }
 0x4af   : > { %v1156_v39 = vpop.f32.mrb[6].mxu0 }
 0x4b0   : > { %v1232_v40 = vadd.f32 %v1231_v37, %v1156_v39  ;;  %v2832_v41 = vpop.f32.mrb[7].mxu0 }
 0x4b3   : > { %v1310_v42 = vpop.f32.mrb[8].mxu0  ;;  %v1390_v43 = vpop.f32.mrb[16].mxu1 }
 0x4b4   : > { %v1314_v44 = vadd.f32 %v1310_v42, %v1232_v40  ;;  %v2842_v45 = vpop.f32.mrb[9].mxu0  ;;  %v2847_v46 = vpop.f32.mrb[17].mxu1 }
 0x4b6   : > { %v1394_v47 = vadd.f32 %v1390_v43, %v1314_v44 }
 0x4b7   : > { %v1470_v48 = vpop.f32.mrb[10].mxu0  ;;  %v1550_v49 = vpop.f32.mrb[18].mxu1 }
 0x4b8   : > { %v1474_v50 = vadd.f32 %v1470_v48, %v1394_v47  ;;  %v2852_v51 = vpop.f32.mrb[11].mxu0  ;;  %v2857_v52 = vpop.f32.mrb[19].mxu1  ;;  %v2695_v47 = vld [vmem:[%s3321_s3 + $0xc] sm:$0xf] }
 0x4b9   : > { %v2696_v51 = vld [vmem:[%s3321_s3 + $0x10] sm:$0xf] }
 0x4ba   : > { %v1554_v53 = vadd.f32 %v1550_v49, %v1474_v50 }
 0x4bb   : > { %v1630_v54 = vpop.f32.mrb[12].mxu0  ;;  %v1710_v55 = vpop.f32.mrb[20].mxu1 }
 0x4bc   : > { %v1634_v56 = vadd.f32 %v1630_v54, %v1554_v53  ;;  %v2862_v57 = vpop.f32.mrb[13].mxu0  ;;  %v2867_v58 = vpop.f32.mrb[21].mxu1 }
 0x4be   : > { %v1714_v59 = vadd.f32 %v1710_v55, %v1634_v56 }
 0x4bf   : > { %v1790_v60 = vpop.f32.mrb[14].mxu0 }
 0x4c0   : > { %v1794_v62 = vadd.f32 %v1790_v60, %v1714_v59  ;;  %v2872_v63 = vpop.f32.mrb[15].mxu0  ;;  %v2697_v60 = vld [vmem:[%s3321_s3 + $0x14] sm:$0xf] }
 0x4c2   : > { %v1802_v0 = vadd.f32 %v1800_v61, %v1794_v62 }
 0x4c4   : > { %v1803_v2 = vmax.f32 %v1802_v0, 0.0 }
 0x4c6   : > { %1810 = vrot.lane.b32.xlu1 %v1803_v2, %s3001_s20  ;;  %1805 = vrot.lane.b32.xlu0 %v1803_v2, %s2998_s17  ;;  %s3007_s17 = smov 116  }
 0x4ca   : > { %1815 = vrot.lane.b32.xlu0 %v1803_v2, %s3000_s19  ;;  %s3008_s19 = smov 118  }
 0x538   : > { %v1811_v3 = vpop.permute.xlu1 %1810  ;;  %v1806_v4 = vpop.permute.xlu0 %1805 }
 0x539   : > { %1809 = vst.msk [vmem:[#allocation4] sm:$0xf] %vm1808_vm4, %v1806_v4 }
 0x53a   : > { %1814 = vst.msk [vmem:[#allocation4] sm:$0xf] %vm1813_vm5, %v1811_v3 }
 0x53c   : > { %v1816_v5 = vpop.permute.xlu0 %1815 }
 0x53d   : > { %1819 = vst.msk [vmem:[#allocation4] sm:$0xf] %vm1818_vm6, %v1816_v5 }
 0x544   : > { %v1820_v6 = vld [vmem:[#allocation4] sm:$0xf] }
 0x545   : > { %1980 = vrot.lane.b32.xlu0 %v1820_v6, %s2990_s6  ;;  %1826 = vrot.lane.b32.xlu1 %v1820_v6, %s2991_s7  ;;  %s3009_s6 = smov 104   ;;  %s193_s7 = scalar_lea.vmem %s3322_s4, %s3324_s16 }
 0x546   : > { %2879 = vmatpush3.msk.msra.mxu0 %vm337_vm10, %v1820_v6 }
 0x547   : > { %2881 = vmatmul.mubr.msk.f32.vlgmr.msra.gmra.mrb[16].mxu0 %vm333_vm11, %v2668_v7  ;;  %2888 = vmatprep.subr.mxu0 %v2981_v1 }
 0x548   : > { %2890 = vmatprep.mubr.msk.f32.mxu0 %vm2980_vm0, %v2981_v1 }
 0x549   : > { %2140 = vrot.lane.b32.xlu0 %v1820_v6, %s3007_s17  ;;  %2060 = vrot.lane.b32.xlu1 %v1820_v6, %s3008_s19 }
 0x54d   : > { %2300 = vrot.lane.b32.xlu0 %v1820_v6, %s2992_s8  ;;  %2220 = vrot.lane.b32.xlu1 %v1820_v6, %s3003_s24 }
 0x551   : > { %2460 = vrot.lane.b32.xlu0 %v1820_v6, %s3009_s6  ;;  %2380 = vrot.lane.b32.xlu1 %v1820_v6, %s2995_s11 }
 0x5b7   : > { %v1981_v9 = vpop.permute.xlu0 %1980  ;;  %v1827_v10 = vpop.permute.xlu1 %1826 }
 0x5b8   : > { %2874 = vmatpush3.msk.msra.mxu1 %vm337_vm10, %v1827_v10 }
 0x5b9   : > { %2876 = vmatmul.mubr.msk.f32.vlgmr.msra.gmra.mrb[22].mxu1 %vm333_vm11, %v2669_v8  ;;  %2883 = vmatprep.subr.mxu1 %v2981_v1 }
 0x5ba   : > { %2884 = vmatpush3.msk.msra.mxu1 %vm337_vm10, %v1981_v9  ;;  %2885 = vmatprep.mubr.msk.f32.mxu1 %vm2980_vm0, %v2981_v1 }
 0x5bb   : > { %v2141_v13 = vpop.permute.xlu0 %2140  ;;  %v2061_v14 = vpop.permute.xlu1 %2060  ;;  %2893 = vmatprep.subr.mxu1 %v2981_v1 }
 0x5bc   : > { %2889 = vmatpush3.msk.msra.mxu0 %vm337_vm10, %v2061_v14 }
 0x5bd   : > { %2886 = vmatmul.mubr.msk.f32.vlgmr.msra.gmra.mrb[24].mxu1 %vm333_vm11, %v2674_v11  ;;  %2891 = vmatmul.mubr.msk.f32.vlgmr.msra.gmra.mrb[18].mxu0 %vm333_vm11, %v2677_v12 }
 0x5be   : > { %2894 = vmatpush3.msk.msra.mxu1 %vm337_vm10, %v2141_v13  ;;  %2898 = vmatprep.subr.mxu0 %v2981_v1 }
 0x5bf   : > { %v2301_v17 = vpop.permute.xlu0 %2300  ;;  %v2221_v18 = vpop.permute.xlu1 %2220  ;;  %2895 = vmatprep.mubr.msk.f32.mxu1 %vm2980_vm0, %v2981_v1  ;;  %2903 = vmatprep.subr.mxu1 %v2981_v1 }
 0x5c0   : > { %2899 = vmatpush3.msk.msra.mxu0 %vm337_vm10, %v2221_v18  ;;  %2900 = vmatprep.mubr.msk.f32.mxu0 %vm2980_vm0, %v2981_v1 }
 0x5c1   : > { %2896 = vmatmul.mubr.msk.f32.vlgmr.msra.gmra.mrb[26].mxu1 %vm333_vm11, %v2680_v15  ;;  %2901 = vmatmul.mubr.msk.f32.vlgmr.msra.gmra.mrb[20].mxu0 %vm333_vm11, %v2683_v16 }
 0x5c2   : > { %2904 = vmatpush3.msk.msra.mxu1 %vm337_vm10, %v2301_v17  ;;  %2908 = vmatprep.subr.mxu0 %v2981_v1 }
 0x5c3   : > { %v2461_v21 = vpop.permute.xlu0 %2460  ;;  %v2381_v22 = vpop.permute.xlu1 %2380  ;;  %2905 = vmatprep.mubr.msk.f32.mxu1 %vm2980_vm0, %v2981_v1  ;;  %2913 = vmatprep.subr.mxu1 %v2981_v1 }
 0x5c4   : > { %2909 = vmatpush3.msk.msra.mxu0 %vm337_vm10, %v2381_v22  ;;  %2910 = vmatprep.mubr.msk.f32.mxu0 %vm2980_vm0, %v2981_v1 }
 0x5c5   : > { %2906 = vmatmul.mubr.msk.f32.vlgmr.msra.gmra.mrb[28].mxu1 %vm333_vm11, %v2686_v19  ;;  %2911 = vmatmul.mubr.msk.f32.vlgmr.msra.gmra.mrb[22].mxu0 %vm333_vm11, %v2689_v20 }
 0x5c6   : > { %2914 = vmatpush3.msk.msra.mxu1 %vm337_vm10, %v2461_v21  ;;  %2915 = vmatprep.mubr.msk.f32.mxu1 %vm2980_vm0, %v2981_v1  ;;  %vm2545_vm0 = vcmask 3072  }
 0x5c9   : > { %2916 = vmatmul.mubr.msk.f32.vlgmr.msra.gmra.mrb[30].mxu1 %vm333_vm11, %v2692_v23 }
 0x61a   : > { %v1974_v24 = vpop.f32.mrb[16].mxu0 }
 0x61b   : > { %v2882_v25 = vpop.f32.mrb[17].mxu0 }
 0x68c   : > { %v1899_v26 = vpop.f32.mrb[22].mxu1 }
 0x68d   : > { %v1975_v27 = vadd.f32 %v1974_v24, %v1899_v26  ;;  %v2877_v28 = vpop.f32.mrb[23].mxu1 }
 0x690   : > { %v2053_v29 = vpop.f32.mrb[24].mxu1  ;;  %v2133_v30 = vpop.f32.mrb[18].mxu0 }
 0x691   : > { %v2057_v31 = vadd.f32 %v2053_v29, %v1975_v27  ;;  %v2887_v32 = vpop.f32.mrb[25].mxu1  ;;  %v2892_v33 = vpop.f32.mrb[19].mxu0 }
 0x693   : > { %v2137_v34 = vadd.f32 %v2133_v30, %v2057_v31 }
 0x694   : > { %v2213_v35 = vpop.f32.mrb[26].mxu1  ;;  %v2293_v36 = vpop.f32.mrb[20].mxu0 }
 0x695   : > { %v2217_v1 = vadd.f32 %v2213_v35, %v2137_v34  ;;  %v2897_v37 = vpop.f32.mrb[27].mxu1  ;;  %v2902_v38 = vpop.f32.mrb[21].mxu0 }
 0x697   : > { %v2297_v39 = vadd.f32 %v2293_v36, %v2217_v1 }
 0x698   : > { %v2373_v40 = vpop.f32.mrb[28].mxu1  ;;  %v2453_v41 = vpop.f32.mrb[22].mxu0 }
 0x699   : > { %v2377_v42 = vadd.f32 %v2373_v40, %v2297_v39  ;;  %v2907_v43 = vpop.f32.mrb[29].mxu1  ;;  %v2912_v44 = vpop.f32.mrb[23].mxu0 }
 0x69b   : > { %v2457_v45 = vadd.f32 %v2453_v41, %v2377_v42 }
 0x69c   : > { %v2533_v46 = vpop.f32.mrb[30].mxu1 }
 0x69d   : > { %v2537_v48 = vadd.f32 %v2533_v46, %v2457_v45  ;;  %v2917_v49 = vpop.f32.mrb[31].mxu1 }
 0x69f   : > { %v2540_v50 = vadd.f32 %v2695_v47, %v2537_v48 }
 0x6a1   : > { %v2541_v52 = vmax.f32 %v2540_v50, 0.0 }
 0x6a3   : > { %v2544_v53 = vmul.f32 %v2696_v51, %v2541_v52 }
 0x6a5   : > { %v2546_v54 = vsel %vm2545_vm0, %v2544_v53, 0.0 }
 0x6a6   : > { %v2547_v55 = vrot.slane %v2546_v54, 4 }
 0x6a8   : > { %v2548_v56 = vadd.f32 %v2547_v55, %v2546_v54 }
 0x6aa   : > { %v2549_v57 = vrot.slane %v2548_v56, 2 }
 0x6ac   : > { %v2550_v58 = vadd.f32 %v2549_v57, %v2548_v56 }
 0x6ae   : > { %v2551_v59 = vrot.slane %v2550_v58, 1 }
 0x6b0   : > { %v2552_v61 = vadd.f32 %v2551_v59, %v2550_v58 }
 0x6b2   : > { %v2555_v62 = vadd.f32 %v2697_v60, %v2552_v61 }
 0x6b4   : > { %2557 = vst.msk [vmem:[%s193_s7] sm:$0x1] %vm2556_vm7, %v2555_v62 }
 0x6b5 PF: > { %s14_s15 = sadd.s32 1, %s2977_s15  }
 0x6b6   : > { %p11_p4 = scmp.ge.s32.totalorder %s14_s15, 4  }
 0x6b8   :  { %13 = sbr.rel (!%p11_p4) target bundleno = 1 (0x1), region = 97 }

</bundles_post_ra>
